<compile_context>
chip_gen: v7x
topology: tpu7x:2x2x1
jax: 0.10.0
libtpu: 0.0.40
codegen_flags: <defaults>
</compile_context>

<pallas_src>
import functools
import math

import jax
import jax.numpy as jnp
from jax import lax
from jax.experimental import pallas as pl
from jax.experimental.pallas import tpu as pltpu

# ----------------------------- configuration -------------------------------
BATCH = 2
SEQ = 8          # number of patches / tokens
EMBED = 32       # embed_size
NUM_HEADS = 4
HEAD = EMBED // NUM_HEADS
EXPANSION = 4
HIDDEN = EXPANSION * EMBED
LN_EPS = 1e-5    # PyTorch nn.LayerNorm default
LANE = 128       # TPU lane-tile width; each head's Hd is zero-padded to this


# ------------------------------- kernel ------------------------------------
def _transformer_block_kernel(
    x_ref,                      # (B*N, E)
    ln1_w_ref, ln1_b_ref,       # (1, E)
    wqkv_ref, bqkv_ref,         # (E, 3*H*LANE), (1, 3*H*LANE)  per-head padded
    wd_ref, bd_ref,             # (H*LANE, E), (1, E)           row-padded dense
    ln2_w_ref, ln2_b_ref,       # (1, E)
    w1_ref, b1_ref,             # (E, HIDDEN), (1, HIDDEN)
    w2_ref, b2_ref,             # (HIDDEN, E), (1, E)
    o_ref,                      # (B*N, E)
    *, batch, seq, num_heads, head_size, lane,
):
    x = x_ref[...].astype(jnp.float32)                    # (BN, E)

    def layer_norm(v, w, b):
        mu = jnp.mean(v, axis=-1, keepdims=True)
        var = jnp.mean((v - mu) * (v - mu), axis=-1, keepdims=True)
        return (v - mu) * lax.rsqrt(var + LN_EPS) * w + b

    # ---- sub-block 1: pre-LN multi-head self-attention ----
    xn = layer_norm(x, ln1_w_ref[...], ln1_b_ref[...])    # (BN, E)

    # One fused QKV matmul.  Output columns are laid out per (tensor, head),
    # each padded to a full 128-lane tile: col (t*H + h)*LANE + d  (d < Hd).
    qkv = jnp.dot(xn, wqkv_ref[...],
                  preferred_element_type=jnp.float32) + bqkv_ref[...]   # (BN, 3*H*LANE)

    def gather_heads(tensor_idx):
        # lane-tile-aligned slices + tile-aligned reshape/concat only
        blocks = []
        for h in range(num_heads):
            c = (tensor_idx * num_heads + h) * lane
            blocks.append(qkv[:, c:c + lane].reshape(batch, seq, lane))
        # index = h*batch + b  (head-major);  padded lanes (>= Hd) are zero
        return jnp.concatenate(blocks, axis=0)             # (H*B, N, LANE)

    q3 = gather_heads(0)
    k3 = gather_heads(1)
    v3 = gather_heads(2)

    inv_sqrt_d = 1.0 / math.sqrt(head_size)
    # Padded lanes contribute exact zeros to the contraction -> math unchanged.
    s = jnp.einsum("bqd,bkd->bqk", q3, k3,
                   preferred_element_type=jnp.float32) * inv_sqrt_d     # (H*B, N, N)
    s = s - jnp.max(s, axis=-1, keepdims=True)                          # stable softmax
    p = jnp.exp(s)
    p = p * pl.reciprocal(jnp.sum(p, axis=-1, keepdims=True), approx=True)
    ctx3 = jnp.einsum("bqk,bkd->bqd", p, v3,
                      preferred_element_type=jnp.float32)               # (H*B, N, LANE)

    # Merge heads WITHOUT relayout: place the per-head 128-wide context blocks
    # side by side (lane-tile aligned) and let the row-padded dense weight
    # (zero rows for padded lanes) perform the head merge inside the matmul.
    rows = []
    for b in range(batch):
        rows.append(jnp.concatenate(
            [ctx3[h * batch + b] for h in range(num_heads)], axis=-1))  # (N, H*LANE)
    ctx2d = jnp.concatenate(rows, axis=0)                               # (BN, H*LANE)

    attention = jnp.dot(ctx2d, wd_ref[...],
                        preferred_element_type=jnp.float32) + bd_ref[...]
    out1 = x + attention                                  # residual (dropout p=0)

    # ---- sub-block 2: pre-LN MLP (exact erf GELU == torch.nn.GELU default) ----
    xn2 = layer_norm(out1, ln2_w_ref[...], ln2_b_ref[...])
    hdn = jnp.dot(xn2, w1_ref[...],
                  preferred_element_type=jnp.float32) + b1_ref[...]
    hdn = 0.5 * hdn * (1.0 + lax.erf(hdn * (1.0 / math.sqrt(2.0))))
    mlp = jnp.dot(hdn, w2_ref[...],
                  preferred_element_type=jnp.float32) + b2_ref[...]

    o_ref[...] = (out1 + mlp).astype(o_ref.dtype)         # residual (dropout p=0)


# ------------------------------- wrapper ------------------------------------
def transformer_block(x, params):
    """x: (B, N, E) float32.  params: dict of (in, out)-layout weights."""
    B, N, E = x.shape
    H, HD = NUM_HEADS, HEAD
    x2d = x.reshape(B * N, E)   # free: merges leading dims only

    # ---- wrapper-side weight layout (pure, one-time XLA ops) ----
    # Fused QKV weight with each head's Hd output columns zero-padded to a full
    # 128-lane tile so every in-kernel head slice is lane-tile aligned.
    def pad_head_columns(w, b):
        w3 = jnp.pad(w.reshape(E, H, HD), ((0, 0), (0, 0), (0, LANE - HD)))
        b3 = jnp.pad(b.reshape(1, H, HD), ((0, 0), (0, 0), (0, LANE - HD)))
        return w3.reshape(E, H * LANE), b3.reshape(1, H * LANE)

    wq_p, bq_p = pad_head_columns(params["wq"], params["bq"])
    wk_p, bk_p = pad_head_columns(params["wk"], params["bk"])
    wv_p, bv_p = pad_head_columns(params["wv"], params["bv"])
    wqkv = jnp.concatenate([wq_p, wk_p, wv_p], axis=1)     # (E, 3*H*LANE)
    bqkv = jnp.concatenate([bq_p, bk_p, bv_p], axis=1)     # (1, 3*H*LANE)

    # Dense (output-projection) weight with zero rows inserted for the padded
    # lanes, so the padded per-head contexts feed it directly (merge-by-matmul).
    wd_p = jnp.pad(params["wd"].reshape(H, HD, E),
                   ((0, 0), (0, LANE - HD), (0, 0))).reshape(H * LANE, E)

    args = (
        x2d,
        params["ln1_w"], params["ln1_b"],
        wqkv, bqkv,
        wd_p, params["bd"],
        params["ln2_w"], params["ln2_b"],
        params["w1"], params["b1"], params["w2"], params["b2"],
    )

    kernel = functools.partial(
        _transformer_block_kernel,
        batch=B, seq=N, num_heads=H, head_size=HD, lane=LANE)

    out2d = pl.pallas_call(
        kernel,
        out_shape=jax.ShapeDtypeStruct((B * N, E), x.dtype),
        # no grid: single invocation, whole arrays resident in VMEM (~0.5 MiB)
        in_specs=[pl.BlockSpec(memory_space=pltpu.MemorySpace.VMEM)
                  for _ in args],
        out_specs=pl.BlockSpec(memory_space=pltpu.MemorySpace.VMEM),
    )(*args)
    return out2d.reshape(B, N, E)


# ------------------------- deterministic parameters --------------------------
def make_params(key):
    ks = jax.random.split(key, 8)
    scale = 0.05

    def lin(k, fan_in, fan_out):
        # stored directly as (in, out) -- i.e. already W^T relative to PyTorch
        w = scale * jax.random.normal(k, (fan_in, fan_out), jnp.float32)
        b = scale * jax.random.normal(jax.random.fold_in(k, 1), (1, fan_out),
                                      jnp.float32)
        return w, b

    wq, bq = lin(ks[0], EMBED, EMBED)
    wk, bk = lin(ks[1], EMBED, EMBED)
    wv, bv = lin(ks[2], EMBED, EMBED)
    wd, bd = lin(ks[3], EMBED, EMBED)
    w1, b1 = lin(ks[4], EMBED, HIDDEN)
    w2, b2 = lin(ks[5], HIDDEN, EMBED)

    return dict(
        ln1_w=jnp.ones((1, EMBED), jnp.float32),
        ln1_b=jnp.zeros((1, EMBED), jnp.float32),
        ln2_w=jnp.ones((1, EMBED), jnp.float32),
        ln2_b=jnp.zeros((1, EMBED), jnp.float32),
        wq=wq, bq=bq, wk=wk, bk=bk, wv=wv, bv=bv, wd=wd, bd=bd,
        w1=w1, b1=b1, w2=w2, b2=b2,
    )


# ------------------------------ pure-JAX reference ---------------------------
def reference(x, p):
    def ln(v, w, b):
        mu = jnp.mean(v, axis=-1, keepdims=True)
        var = jnp.mean((v - mu) ** 2, axis=-1, keepdims=True)
        return (v - mu) / jnp.sqrt(var + LN_EPS) * w + b

    xn = ln(x, p["ln1_w"], p["ln1_b"])
    q = xn @ p["wq"] + p["bq"]
    k = xn @ p["wk"] + p["bk"]
    v = xn @ p["wv"] + p["bv"]
    B, N, E = x.shape
    q = q.reshape(B, N, NUM_HEADS, HEAD).transpose(0, 2, 1, 3)
    k = k.reshape(B, N, NUM_HEADS, HEAD).transpose(0, 2, 1, 3)
    v = v.reshape(B, N, NUM_HEADS, HEAD).transpose(0, 2, 1, 3)
    s = jnp.einsum("bhqd,bhkd->bhqk", q, k) / math.sqrt(HEAD)
    pr = jax.nn.softmax(s, axis=-1)
    ctx = jnp.einsum("bhqk,bhkd->bhqd", pr, v)
    ctx = ctx.transpose(0, 2, 1, 3).reshape(B, N, E)
    att = ctx @ p["wd"] + p["bd"]
    out1 = x + att
    xn2 = ln(out1, p["ln2_w"], p["ln2_b"])
    h = xn2 @ p["w1"] + p["b1"]
    h = 0.5 * h * (1.0 + lax.erf(h / math.sqrt(2.0)))
    return out1 + (h @ p["w2"] + p["b2"])


# ---------------------------------- main -------------------------------------
if __name__ == "__main__":
    key = jax.random.PRNGKey(0)
    kx, kp = jax.random.split(key)
    x = jax.random.normal(kx, (BATCH, SEQ, EMBED), jnp.float32)
    params = make_params(kp)

    out = jax.jit(transformer_block)(x, params)
    out = jax.block_until_ready(out)

    ref = reference(x, params)
    assert out.shape == (BATCH, SEQ, EMBED)
    assert jnp.allclose(out, ref, rtol=2e-3, atol=2e-3), "mismatch vs reference"

    print("KERNEL_OK")
</pallas_src>

<mosaic_0001>
module attributes {stable_mosaic.version = 11 : i64} {
  func.func @_transformer_block_kernel(%arg0: memref<16x32xf32, #tpu.memory_space<vmem>>, %arg1: memref<1x32xf32, #tpu.memory_space<vmem>>, %arg2: memref<1x32xf32, #tpu.memory_space<vmem>>, %arg3: memref<32x1536xf32, #tpu.memory_space<vmem>>, %arg4: memref<1x1536xf32, #tpu.memory_space<vmem>>, %arg5: memref<512x32xf32, #tpu.memory_space<vmem>>, %arg6: memref<1x32xf32, #tpu.memory_space<vmem>>, %arg7: memref<1x32xf32, #tpu.memory_space<vmem>>, %arg8: memref<1x32xf32, #tpu.memory_space<vmem>>, %arg9: memref<32x128xf32, #tpu.memory_space<vmem>>, %arg10: memref<1x128xf32, #tpu.memory_space<vmem>>, %arg11: memref<128x32xf32, #tpu.memory_space<vmem>>, %arg12: memref<1x32xf32, #tpu.memory_space<vmem>>, %arg13: memref<16x32xf32, #tpu.memory_space<vmem>>) attributes {dimension_semantics = [], scalar_prefetch = 0 : i64, scratch_operands = 0 : i64, tpu.core_type = #tpu.core_type<tc>} {
    %c0 = arith.constant 0 : index
    %c0_0 = arith.constant 0 : index
    %0 = vector.load %arg0[%c0, %c0_0] : memref<16x32xf32, #tpu.memory_space<vmem>>, vector<16x32xf32>
    %c0_1 = arith.constant 0 : index
    %c0_2 = arith.constant 0 : index
    %1 = vector.load %arg1[%c0_1, %c0_2] : memref<1x32xf32, #tpu.memory_space<vmem>>, vector<1x32xf32>
    %c0_3 = arith.constant 0 : index
    %c0_4 = arith.constant 0 : index
    %2 = vector.load %arg2[%c0_3, %c0_4] : memref<1x32xf32, #tpu.memory_space<vmem>>, vector<1x32xf32>
    %cst = arith.constant dense<0.000000e+00> : vector<16xf32>
    %3 = vector.multi_reduction <add>, %0, %cst [1] : vector<16x32xf32> to vector<16xf32>
    %4 = vector.shape_cast %3 : vector<16xf32> to vector<16x1xf32>
    %cst_5 = arith.constant 3.200000e+01 : f32
    %5 = vector.broadcast %cst_5 : f32 to vector<16x1xf32>
    %6 = arith.divf %4, %5 : vector<16x1xf32>
    %7 = vector.broadcast %6 : vector<16x1xf32> to vector<16x32xf32>
    %8 = arith.subf %0, %7 : vector<16x32xf32>
    %9 = vector.broadcast %6 : vector<16x1xf32> to vector<16x32xf32>
    %10 = arith.subf %0, %9 : vector<16x32xf32>
    %11 = arith.mulf %8, %10 : vector<16x32xf32>
    %cst_6 = arith.constant dense<0.000000e+00> : vector<16xf32>
    %12 = vector.multi_reduction <add>, %11, %cst_6 [1] : vector<16x32xf32> to vector<16xf32>
    %13 = vector.shape_cast %12 : vector<16xf32> to vector<16x1xf32>
    %cst_7 = arith.constant 3.200000e+01 : f32
    %14 = vector.broadcast %cst_7 : f32 to vector<16x1xf32>
    %15 = arith.divf %13, %14 : vector<16x1xf32>
    %16 = vector.broadcast %6 : vector<16x1xf32> to vector<16x32xf32>
    %17 = arith.subf %0, %16 : vector<16x32xf32>
    %cst_8 = arith.constant 9.99999974E-6 : f32
    %18 = vector.broadcast %cst_8 : f32 to vector<16x1xf32>
    %19 = arith.addf %15, %18 : vector<16x1xf32>
    %20 = math.rsqrt %19 : vector<16x1xf32>
    %21 = vector.broadcast %20 : vector<16x1xf32> to vector<16x32xf32>
    %22 = arith.mulf %17, %21 : vector<16x32xf32>
    %23 = vector.broadcast %1 : vector<1x32xf32> to vector<16x32xf32>
    %24 = arith.mulf %22, %23 : vector<16x32xf32>
    %25 = vector.broadcast %2 : vector<1x32xf32> to vector<16x32xf32>
    %26 = arith.addf %24, %25 : vector<16x32xf32>
    %c0_9 = arith.constant 0 : index
    %c0_10 = arith.constant 0 : index
    %27 = vector.load %arg3[%c0_9, %c0_10] : memref<32x1536xf32, #tpu.memory_space<vmem>>, vector<32x1536xf32>
    %cst_11 = arith.constant dense<0.000000e+00> : vector<16x1536xf32>
    %28 = tpu.matmul %26, %27, %cst_11 {dimension_numbers = #tpu.dot_dimension_numbers<[1], [0], [0], [1], [0, 0, 1, 1], [], []>} : vector<16x32xf32>, vector<32x1536xf32>, vector<16x1536xf32> -> vector<16x1536xf32>
    %c0_12 = arith.constant 0 : index
    %c0_13 = arith.constant 0 : index
    %29 = vector.load %arg4[%c0_12, %c0_13] : memref<1x1536xf32, #tpu.memory_space<vmem>>, vector<1x1536xf32>
    %30 = vector.broadcast %29 : vector<1x1536xf32> to vector<16x1536xf32>
    %31 = arith.addf %28, %30 : vector<16x1536xf32>
    %32 = vector.extract_strided_slice %31 {offsets = [0, 0], sizes = [16, 128], strides = [1, 1]} : vector<16x1536xf32> to vector<16x128xf32>
    %33 = vector.shape_cast %32 : vector<16x128xf32> to vector<2x8x128xf32>
    %34 = vector.extract_strided_slice %31 {offsets = [0, 128], sizes = [16, 128], strides = [1, 1]} : vector<16x1536xf32> to vector<16x128xf32>
    %35 = vector.shape_cast %34 : vector<16x128xf32> to vector<2x8x128xf32>
    %36 = vector.extract_strided_slice %31 {offsets = [0, 256], sizes = [16, 128], strides = [1, 1]} : vector<16x1536xf32> to vector<16x128xf32>
    %37 = vector.shape_cast %36 : vector<16x128xf32> to vector<2x8x128xf32>
    %38 = vector.extract_strided_slice %31 {offsets = [0, 384], sizes = [16, 128], strides = [1, 1]} : vector<16x1536xf32> to vector<16x128xf32>
    %39 = vector.shape_cast %38 : vector<16x128xf32> to vector<2x8x128xf32>
    %40 = tpu.concatenate %33, %35, %37, %39 in 0 : vector<2x8x128xf32>, vector<2x8x128xf32>, vector<2x8x128xf32>, vector<2x8x128xf32> -> vector<8x8x128xf32>
    %41 = vector.extract_strided_slice %31 {offsets = [0, 512], sizes = [16, 128], strides = [1, 1]} : vector<16x1536xf32> to vector<16x128xf32>
    %42 = vector.shape_cast %41 : vector<16x128xf32> to vector<2x8x128xf32>
    %43 = vector.extract_strided_slice %31 {offsets = [0, 640], sizes = [16, 128], strides = [1, 1]} : vector<16x1536xf32> to vector<16x128xf32>
    %44 = vector.shape_cast %43 : vector<16x128xf32> to vector<2x8x128xf32>
    %45 = vector.extract_strided_slice %31 {offsets = [0, 768], sizes = [16, 128], strides = [1, 1]} : vector<16x1536xf32> to vector<16x128xf32>
    %46 = vector.shape_cast %45 : vector<16x128xf32> to vector<2x8x128xf32>
    %47 = vector.extract_strided_slice %31 {offsets = [0, 896], sizes = [16, 128], strides = [1, 1]} : vector<16x1536xf32> to vector<16x128xf32>
    %48 = vector.shape_cast %47 : vector<16x128xf32> to vector<2x8x128xf32>
    %49 = tpu.concatenate %42, %44, %46, %48 in 0 : vector<2x8x128xf32>, vector<2x8x128xf32>, vector<2x8x128xf32>, vector<2x8x128xf32> -> vector<8x8x128xf32>
    %50 = vector.extract_strided_slice %31 {offsets = [0, 1024], sizes = [16, 128], strides = [1, 1]} : vector<16x1536xf32> to vector<16x128xf32>
    %51 = vector.shape_cast %50 : vector<16x128xf32> to vector<2x8x128xf32>
    %52 = vector.extract_strided_slice %31 {offsets = [0, 1152], sizes = [16, 128], strides = [1, 1]} : vector<16x1536xf32> to vector<16x128xf32>
    %53 = vector.shape_cast %52 : vector<16x128xf32> to vector<2x8x128xf32>
    %54 = vector.extract_strided_slice %31 {offsets = [0, 1280], sizes = [16, 128], strides = [1, 1]} : vector<16x1536xf32> to vector<16x128xf32>
    %55 = vector.shape_cast %54 : vector<16x128xf32> to vector<2x8x128xf32>
    %56 = vector.extract_strided_slice %31 {offsets = [0, 1408], sizes = [16, 128], strides = [1, 1]} : vector<16x1536xf32> to vector<16x128xf32>
    %57 = vector.shape_cast %56 : vector<16x128xf32> to vector<2x8x128xf32>
    %58 = tpu.concatenate %51, %53, %55, %57 in 0 : vector<2x8x128xf32>, vector<2x8x128xf32>, vector<2x8x128xf32>, vector<2x8x128xf32> -> vector<8x8x128xf32>
    "tpu.trace_start"() <{level = 10 : i32, message = "bqd,bkd->bqk"}> : () -> ()
    %cst_14 = arith.constant dense<0.000000e+00> : vector<8x8x8xf32>
    %59 = tpu.matmul %40, %49, %cst_14 {dimension_numbers = #tpu.dot_dimension_numbers<[2], [2], [1], [1], [0, 0, 0, 1, 1, 1], [0], [0]>} : vector<8x8x128xf32>, vector<8x8x128xf32>, vector<8x8x8xf32> -> vector<8x8x8xf32>
    "tpu.trace_stop"() : () -> ()
    %cst_15 = arith.constant 0.353553385 : f32
    %60 = vector.broadcast %cst_15 : f32 to vector<8x8x8xf32>
    %61 = arith.mulf %59, %60 : vector<8x8x8xf32>
    %cst_16 = arith.constant dense<0xFF800000> : vector<8x8xf32>
    %62 = vector.multi_reduction <maximumf>, %61, %cst_16 [2] : vector<8x8x8xf32> to vector<8x8xf32>
    %63 = vector.shape_cast %62 : vector<8x8xf32> to vector<8x8x1xf32>
    %64 = vector.broadcast %63 : vector<8x8x1xf32> to vector<8x8x8xf32>
    %65 = arith.subf %61, %64 : vector<8x8x8xf32>
    %66 = math.exp %65 : vector<8x8x8xf32>
    %cst_17 = arith.constant dense<0.000000e+00> : vector<8x8xf32>
    %67 = vector.multi_reduction <add>, %66, %cst_17 [2] : vector<8x8x8xf32> to vector<8x8xf32>
    %68 = vector.shape_cast %67 : vector<8x8xf32> to vector<8x8x1xf32>
    %69 = tpu.reciprocal %68 {approx = true} : vector<8x8x1xf32> -> vector<8x8x1xf32>
    %70 = vector.broadcast %69 : vector<8x8x1xf32> to vector<8x8x8xf32>
    %71 = arith.mulf %66, %70 : vector<8x8x8xf32>
    "tpu.trace_start"() <{level = 10 : i32, message = "bqk,bkd->bqd"}> : () -> ()
    %cst_18 = arith.constant dense<0.000000e+00> : vector<8x8x128xf32>
    %72 = tpu.matmul %71, %58, %cst_18 {dimension_numbers = #tpu.dot_dimension_numbers<[2], [1], [1], [2], [0, 0, 0, 1, 1, 2], [0], [0]>} : vector<8x8x8xf32>, vector<8x8x128xf32>, vector<8x8x128xf32> -> vector<8x8x128xf32>
    "tpu.trace_stop"() : () -> ()
    %73 = vector.extract_strided_slice %72 {offsets = [0, 0, 0], sizes = [1, 8, 128], strides = [1, 1, 1]} : vector<8x8x128xf32> to vector<1x8x128xf32>
    %74 = vector.shape_cast %73 : vector<1x8x128xf32> to vector<8x128xf32>
    %75 = vector.extract_strided_slice %72 {offsets = [2, 0, 0], sizes = [1, 8, 128], strides = [1, 1, 1]} : vector<8x8x128xf32> to vector<1x8x128xf32>
    %76 = vector.shape_cast %75 : vector<1x8x128xf32> to vector<8x128xf32>
    %77 = vector.extract_strided_slice %72 {offsets = [4, 0, 0], sizes = [1, 8, 128], strides = [1, 1, 1]} : vector<8x8x128xf32> to vector<1x8x128xf32>
    %78 = vector.shape_cast %77 : vector<1x8x128xf32> to vector<8x128xf32>
    %79 = vector.extract_strided_slice %72 {offsets = [6, 0, 0], sizes = [1, 8, 128], strides = [1, 1, 1]} : vector<8x8x128xf32> to vector<1x8x128xf32>
    %80 = vector.shape_cast %79 : vector<1x8x128xf32> to vector<8x128xf32>
    %81 = tpu.concatenate %74, %76, %78, %80 in 1 : vector<8x128xf32>, vector<8x128xf32>, vector<8x128xf32>, vector<8x128xf32> -> vector<8x512xf32>
    %82 = vector.extract_strided_slice %72 {offsets = [1, 0, 0], sizes = [1, 8, 128], strides = [1, 1, 1]} : vector<8x8x128xf32> to vector<1x8x128xf32>
    %83 = vector.shape_cast %82 : vector<1x8x128xf32> to vector<8x128xf32>
    %84 = vector.extract_strided_slice %72 {offsets = [3, 0, 0], sizes = [1, 8, 128], strides = [1, 1, 1]} : vector<8x8x128xf32> to vector<1x8x128xf32>
    %85 = vector.shape_cast %84 : vector<1x8x128xf32> to vector<8x128xf32>
    %86 = vector.extract_strided_slice %72 {offsets = [5, 0, 0], sizes = [1, 8, 128], strides = [1, 1, 1]} : vector<8x8x128xf32> to vector<1x8x128xf32>
    %87 = vector.shape_cast %86 : vector<1x8x128xf32> to vector<8x128xf32>
    %88 = vector.extract_strided_slice %72 {offsets = [7, 0, 0], sizes = [1, 8, 128], strides = [1, 1, 1]} : vector<8x8x128xf32> to vector<1x8x128xf32>
    %89 = vector.shape_cast %88 : vector<1x8x128xf32> to vector<8x128xf32>
    %90 = tpu.concatenate %83, %85, %87, %89 in 1 : vector<8x128xf32>, vector<8x128xf32>, vector<8x128xf32>, vector<8x128xf32> -> vector<8x512xf32>
    %91 = tpu.concatenate %81, %90 in 0 : vector<8x512xf32>, vector<8x512xf32> -> vector<16x512xf32>
    %c0_19 = arith.constant 0 : index
    %c0_20 = arith.constant 0 : index
    %92 = vector.load %arg5[%c0_19, %c0_20] : memref<512x32xf32, #tpu.memory_space<vmem>>, vector<512x32xf32>
    %cst_21 = arith.constant dense<0.000000e+00> : vector<16x32xf32>
    %93 = tpu.matmul %91, %92, %cst_21 {dimension_numbers = #tpu.dot_dimension_numbers<[1], [0], [0], [1], [0, 0, 1, 1], [], []>} : vector<16x512xf32>, vector<512x32xf32>, vector<16x32xf32> -> vector<16x32xf32>
    %c0_22 = arith.constant 0 : index
    %c0_23 = arith.constant 0 : index
    %94 = vector.load %arg6[%c0_22, %c0_23] : memref<1x32xf32, #tpu.memory_space<vmem>>, vector<1x32xf32>
    %95 = vector.broadcast %94 : vector<1x32xf32> to vector<16x32xf32>
    %96 = arith.addf %93, %95 : vector<16x32xf32>
    %97 = arith.addf %0, %96 : vector<16x32xf32>
    %c0_24 = arith.constant 0 : index
    %c0_25 = arith.constant 0 : index
    %98 = vector.load %arg7[%c0_24, %c0_25] : memref<1x32xf32, #tpu.memory_space<vmem>>, vector<1x32xf32>
    %c0_26 = arith.constant 0 : index
    %c0_27 = arith.constant 0 : index
    %99 = vector.load %arg8[%c0_26, %c0_27] : memref<1x32xf32, #tpu.memory_space<vmem>>, vector<1x32xf32>
    %cst_28 = arith.constant dense<0.000000e+00> : vector<16xf32>
    %100 = vector.multi_reduction <add>, %97, %cst_28 [1] : vector<16x32xf32> to vector<16xf32>
    %101 = vector.shape_cast %100 : vector<16xf32> to vector<16x1xf32>
    %cst_29 = arith.constant 3.200000e+01 : f32
    %102 = vector.broadcast %cst_29 : f32 to vector<16x1xf32>
    %103 = arith.divf %101, %102 : vector<16x1xf32>
    %104 = vector.broadcast %103 : vector<16x1xf32> to vector<16x32xf32>
    %105 = arith.subf %97, %104 : vector<16x32xf32>
    %106 = vector.broadcast %103 : vector<16x1xf32> to vector<16x32xf32>
    %107 = arith.subf %97, %106 : vector<16x32xf32>
    %108 = arith.mulf %105, %107 : vector<16x32xf32>
    %cst_30 = arith.constant dense<0.000000e+00> : vector<16xf32>
    %109 = vector.multi_reduction <add>, %108, %cst_30 [1] : vector<16x32xf32> to vector<16xf32>
    %110 = vector.shape_cast %109 : vector<16xf32> to vector<16x1xf32>
    %cst_31 = arith.constant 3.200000e+01 : f32
    %111 = vector.broadcast %cst_31 : f32 to vector<16x1xf32>
    %112 = arith.divf %110, %111 : vector<16x1xf32>
    %113 = vector.broadcast %103 : vector<16x1xf32> to vector<16x32xf32>
    %114 = arith.subf %97, %113 : vector<16x32xf32>
    %cst_32 = arith.constant 9.99999974E-6 : f32
    %115 = vector.broadcast %cst_32 : f32 to vector<16x1xf32>
    %116 = arith.addf %112, %115 : vector<16x1xf32>
    %117 = math.rsqrt %116 : vector<16x1xf32>
    %118 = vector.broadcast %117 : vector<16x1xf32> to vector<16x32xf32>
    %119 = arith.mulf %114, %118 : vector<16x32xf32>
    %120 = vector.broadcast %98 : vector<1x32xf32> to vector<16x32xf32>
    %121 = arith.mulf %119, %120 : vector<16x32xf32>
    %122 = vector.broadcast %99 : vector<1x32xf32> to vector<16x32xf32>
    %123 = arith.addf %121, %122 : vector<16x32xf32>
    %c0_33 = arith.constant 0 : index
    %c0_34 = arith.constant 0 : index
    %124 = vector.load %arg9[%c0_33, %c0_34] : memref<32x128xf32, #tpu.memory_space<vmem>>, vector<32x128xf32>
    %cst_35 = arith.constant dense<0.000000e+00> : vector<16x128xf32>
    %125 = tpu.matmul %123, %124, %cst_35 {dimension_numbers = #tpu.dot_dimension_numbers<[1], [0], [0], [1], [0, 0, 1, 1], [], []>} : vector<16x32xf32>, vector<32x128xf32>, vector<16x128xf32> -> vector<16x128xf32>
    %c0_36 = arith.constant 0 : index
    %c0_37 = arith.constant 0 : index
    %126 = vector.load %arg10[%c0_36, %c0_37] : memref<1x128xf32, #tpu.memory_space<vmem>>, vector<1x128xf32>
    %127 = vector.broadcast %126 : vector<1x128xf32> to vector<16x128xf32>
    %128 = arith.addf %125, %127 : vector<16x128xf32>
    %cst_38 = arith.constant 5.000000e-01 : f32
    %129 = vector.broadcast %cst_38 : f32 to vector<16x128xf32>
    %130 = arith.mulf %129, %128 : vector<16x128xf32>
    %cst_39 = arith.constant 0.707106769 : f32
    %131 = vector.broadcast %cst_39 : f32 to vector<16x128xf32>
    %132 = arith.mulf %128, %131 : vector<16x128xf32>
    %133 = math.erf %132 : vector<16x128xf32>
    %cst_40 = arith.constant 1.000000e+00 : f32
    %134 = vector.broadcast %cst_40 : f32 to vector<16x128xf32>
    %135 = arith.addf %134, %133 : vector<16x128xf32>
    %136 = arith.mulf %130, %135 : vector<16x128xf32>
    %c0_41 = arith.constant 0 : index
    %c0_42 = arith.constant 0 : index
    %137 = vector.load %arg11[%c0_41, %c0_42] : memref<128x32xf32, #tpu.memory_space<vmem>>, vector<128x32xf32>
    %cst_43 = arith.constant dense<0.000000e+00> : vector<16x32xf32>
    %138 = tpu.matmul %136, %137, %cst_43 {dimension_numbers = #tpu.dot_dimension_numbers<[1], [0], [0], [1], [0, 0, 1, 1], [], []>} : vector<16x128xf32>, vector<128x32xf32>, vector<16x32xf32> -> vector<16x32xf32>
    %c0_44 = arith.constant 0 : index
    %c0_45 = arith.constant 0 : index
    %139 = vector.load %arg12[%c0_44, %c0_45] : memref<1x32xf32, #tpu.memory_space<vmem>>, vector<1x32xf32>
    %140 = vector.broadcast %139 : vector<1x32xf32> to vector<16x32xf32>
    %141 = arith.addf %138, %140 : vector<16x32xf32>
    %142 = arith.addf %97, %141 : vector<16x32xf32>
    %c0_46 = arith.constant 0 : index
    %c0_47 = arith.constant 0 : index
    %143 = vector.load %arg13[%c0_46, %c0_47] : memref<16x32xf32, #tpu.memory_space<vmem>>, vector<16x32xf32>
    tpu.vector_store %arg13[%c0_46, %c0_47], %142 {strides = array<i32>} : memref<16x32xf32, #tpu.memory_space<vmem>>, vector<16x32xf32>,
    return
  }
}

</mosaic_0001>

<bundles_post_ra>
// kernel: transformer_block.1
= control target key start
LH: loop header
LB: loop body
LE: loop exit
PB: predicated region body
PF: predicated region fallthrough
CT: control target
= control target key end

     0   :  { %vm49_vm0 = vcmask 261120   ;;  %s3653_s0 = inlined_call_operand.vmem [shape: f32[16,32], index: 0, kind: input, shape index: {}]   ;;  %s3654_s1 = inlined_call_operand.vmem [shape: f32[1,32], index: 1, kind: input, shape index: {}]   ;;  %s3655_s2 = inlined_call_operand.vmem [shape: f32[1,32], index: 2, kind: input, shape index: {}]   ;;  %s3656_s3 = inlined_call_operand.vmem [shape: f32[32,1536], index: 3, kind: input, shape index: {}]   ;;  %s3657_s4 = inlined_call_operand.vmem [shape: f32[1,1536], index: 4, kind: input, shape index: {}]   ;;  %s3658_s5 = inlined_call_operand.vmem [shape: f32[512,32], index: 5, kind: input, shape index: {}]   ;;  %s3659_s6 = inlined_call_operand.vmem [shape: f32[1,32], index: 6, kind: input, shape index: {}]   ;;  %s3660_s7 = inlined_call_operand.vmem [shape: f32[1,32], index: 7, kind: input, shape index: {}]   ;;  %s3661_s8 = inlined_call_operand.vmem [shape: f32[1,32], index: 8, kind: input, shape index: {}]   ;;  %s3662_s9 = inlined_call_operand.vmem [shape: f32[32,128], index: 9, kind: input, shape index: {}]   ;;  %s3663_s10 = inlined_call_operand.vmem [shape: f32[1,128], index: 10, kind: input, shape index: {}]   ;;  %s3664_s11 = inlined_call_operand.vmem [shape: f32[128,32], index: 11, kind: input, shape index: {}]   ;;  %s3665_s12 = inlined_call_operand.vmem [shape: f32[1,32], index: 12, kind: input, shape index: {}]   ;;  %s3666_s13 = inlined_call_operand.hbm [shape: f32[16,32], index: 13, kind: output, shape index: {}]  }
   0x1   :  { %v45_v0 = vld [vmem:[%s3653_s0] sm:$0xff]  ;;  %v46_v1 = vld [vmem:[%s3653_s0 + $0x8] sm:$0xff] }
   0x2   :  { %18 = vsyncpa [#allocation3], 0  ;;  %v50_v2 = vsel %vm49_vm0, %v45_v0, 0.0  ;;  %v53_v3 = vsel %vm49_vm0, %v46_v1, 0.0  ;;  %v94_v14 = vld [vmem:[%s3656_s3 + $0x8] sm:$0xff]  ;;  %v100_v16 = vld [vmem:[%s3656_s3 + $0x38] sm:$0xff] }
   0x3   :  { %51 = vadd.xlane.f32.xlu0 %v50_v2  ;;  %v106_v15 = vld [vmem:[%s3656_s3 + $0x68] sm:$0xff]  ;;  %v112_v18 = vld [vmem:[%s3656_s3 + $0x98] sm:$0xff]  ;;  %v93_v19 = vld [vmem:[%s3656_s3] sm:$0xff]  ;;  %v2919_v43 = vmov 0.0   ;;  %vm2920_vm1 = vmmov 0   ;;  %vm1241_vm2 = vcmask 64512  }
   0x4   :  { %v2688_v17 = vpack.c.bf16 %v106_v15, %v94_v14  ;;  %v105_v20 = vld [vmem:[%s3656_s3 + $0x60] sm:$0xff]  ;;  %v2712_v21 = vpack.c.bf16 %v112_v18, %v100_v16  ;;  %v99_v23 = vld [vmem:[%s3656_s3 + $0x30] sm:$0xff]  ;;  %v118_v26 = vld [vmem:[%s3656_s3 + $0xc8] sm:$0xff]  ;;  %275 = vmatprep.mubr.f32.mxu0 %v2919_v43  ;;  %506 = vmatprep.mubr.f32.mxu1 %v2919_v43 }
   0x5   :  { %v2690_v22 = vpack.c.bf16 %v105_v20, %v93_v19  ;;  %v111_v24 = vld [vmem:[%s3656_s3 + $0x90] sm:$0xff]  ;;  %v130_v27 = vld [vmem:[%s3656_s3 + $0x128] sm:$0xff]  ;;  %v124_v28 = vld [vmem:[%s3656_s3 + $0xf8] sm:$0xff] }
   0x6   :  { %2689 = vmatprep.subr.bf16.mxu0 %v2688_v17  ;;  %v2714_v25 = vpack.c.bf16 %v111_v24, %v99_v23  ;;  %2713 = vmatprep.subr.bf16.mxu1 %v2712_v21  ;;  %v2692_v29 = vpack.c.bf16 %v130_v27, %v118_v26  ;;  %v136_v30 = vld [vmem:[%s3656_s3 + $0x158] sm:$0xff]  ;;  %v117_v31 = vld [vmem:[%s3656_s3 + $0xc0] sm:$0xff]  ;;  %v123_v35 = vld [vmem:[%s3656_s3 + $0xf0] sm:$0xff] }
   0x7   :  { %54 = vadd.xlane.f32.xlu0 %v53_v3  ;;  %2691 = vmatpush1.bf16.msra.mxu0 %v2690_v22  ;;  %v129_v32 = vld [vmem:[%s3656_s3 + $0x120] sm:$0xff]  ;;  %v2716_v33 = vpack.c.bf16 %v136_v30, %v124_v28  ;;  %v135_v36 = vld [vmem:[%s3656_s3 + $0x150] sm:$0xff]  ;;  %v96_v38 = vld [vmem:[%s3656_s3 + $0x18] sm:$0xff] }
   0x8   :  { %2715 = vmatpush1.bf16.msra.mxu1 %v2714_v25  ;;  %v2694_v34 = vpack.c.bf16 %v129_v32, %v117_v31  ;;  %2693 = vmatprep.subr.bf16.mxu0 %v2692_v29  ;;  %v2718_v37 = vpack.c.bf16 %v135_v36, %v123_v35  ;;  %v108_v39 = vld [vmem:[%s3656_s3 + $0x78] sm:$0xff]  ;;  %v2401_v52 = vld [vmem:[%s3654_s1] ss:$0 sm:$0xff]  ;;  %v95_v53 = vld [vmem:[%s3656_s3 + $0x10] sm:$0xff] }
   0x9   :  { %2717 = vmatprep.subr.bf16.mxu1 %v2716_v33  ;;  %v104_v40 = vld [vmem:[%s3656_s3 + $0x58] sm:$0xff]  ;;  %v2696_v41 = vpack.c.bf16 %v108_v39, %v96_v38  ;;  %v107_v55 = vld [vmem:[%s3656_s3 + $0x70] sm:$0xff]  ;;  %v2402_v58 = vld [vmem:[%s3655_s2] ss:$0 sm:$0xff]  ;;  %v145_v39 = vlaneseq }
   0xa   :  { %v116_v42 = vld [vmem:[%s3656_s3 + $0xb8] sm:$0xff]  ;;  %v103_v56 = vld [vmem:[%s3656_s3 + $0x50] sm:$0xff]  ;;  %v97_v17 = vld [vmem:[%s3656_s3 + $0x20] sm:$0xff] }
   0xb   :  { %2695 = vmatpush1.bf16.msra.mxu0 %v2694_v34  ;;  %v3074_v44 = vpack.c.bf16 %v116_v42, %v104_v40  ;;  %v115_v57 = vld [vmem:[%s3656_s3 + $0xb0] sm:$0xff]  ;;  %v120_v59 = vld [vmem:[%s3656_s3 + $0xd8] sm:$0xff]  ;;  %v109_v18 = vld [vmem:[%s3656_s3 + $0x80] sm:$0xff]  ;;  %v3210_v40 = vshrl.u32 %v145_v39, 7 }
   0xc   :  { %2719 = vmatpush1.bf16.msra.mxu1 %v2718_v37  ;;  %2697 = vmatprep.subr.bf16.mxu0 %v2696_v41  ;;  %v132_v61 = vld [vmem:[%s3656_s3 + $0x138] sm:$0xff]  ;;  %v3108_v2 = vpack.c.bf16 %v115_v57, %v103_v56  ;;  %v119_v3 = vld [vmem:[%s3656_s3 + $0xd0] sm:$0xff]  ;;  %v122_v20 = vld [vmem:[%s3656_s3 + $0xe8] sm:$0xff]  ;;  %v2706_v22 = vpack.c.bf16 %v109_v18, %v97_v17 }
   0xd   :  { %2840 = vmatprep.subr.bf16.mxu1 %v3074_v44  ;;  %v128_v62 = vld [vmem:[%s3656_s3 + $0x118] sm:$0xff]  ;;  %v134_v21 = vld [vmem:[%s3656_s3 + $0x148] sm:$0xff]  ;;  %v121_v24 = vld [vmem:[%s3656_s3 + $0xe0] sm:$0xff]  ;;  %v155_v41 = vsub.s32 2, %v3210_v40 }
   0xe   :  { %v140_v63 = vld [vmem:[%s3656_s3 + $0x178] sm:$0xff]  ;;  %v2708_v23 = vpack.c.bf16 %v134_v21, %v122_v20  ;;  %v133_v25 = vld [vmem:[%s3656_s3 + $0x140] sm:$0xff]  ;;  %v102_v26 = vld [vmem:[%s3656_s3 + $0x48] sm:$0xff] }
   0xf   :  { %v114_v27 = vld [vmem:[%s3656_s3 + $0xa8] sm:$0xff]  ;;  %v2710_v28 = vpack.c.bf16 %v133_v25, %v121_v24  ;;  %v101_v30 = vld [vmem:[%s3656_s3 + $0x40] sm:$0xff] }
  0x10   :  { %v2720_v29 = vpack.c.bf16 %v114_v27, %v102_v26  ;;  %v113_v31 = vld [vmem:[%s3656_s3 + $0xa0] sm:$0xff]  ;;  %v126_v32 = vld [vmem:[%s3656_s3 + $0x108] sm:$0xff] }
  0x11   :  { %v138_v33 = vld [vmem:[%s3656_s3 + $0x168] sm:$0xff]  ;;  %v2722_v34 = vpack.c.bf16 %v113_v31, %v101_v30  ;;  %v125_v36 = vld [vmem:[%s3656_s3 + $0x100] sm:$0xff] }
  0x12   :  { %v2724_v35 = vpack.c.bf16 %v138_v33, %v126_v32  ;;  %v137_v37 = vld [vmem:[%s3656_s3 + $0x160] sm:$0xff]  ;;  %v3216_v42 = vld [vmem:[%s3657_s4 + $0x8] sm:$0xf] }
  0x13   :  { %v2726_v38 = vpack.c.bf16 %v137_v37, %v125_v36 }
  0x90   :  { %v52_v4 = vpop.xlane.xlu0 %51 }
  0x91   :  { %v57_v5 = vmul.f32 0.03125, %v52_v4 }
  0x93   :  { %v3002_v6 = vsub.f32 %v45_v0, %v57_v5 }
  0x94   :  { %v55_v7 = vpop.xlane.xlu0 %54 }
  0x95   :  { %v58_v8 = vmul.f32 0.03125, %v55_v7  ;;  %v61_v9 = vmul.f32 %v3002_v6, %v3002_v6  ;;  %v127_v7 = vld [vmem:[%s3656_s3 + $0x110] sm:$0xff] }
  0x97   :  { %v3006_v10 = vsub.f32 %v46_v1, %v58_v8  ;;  %v63_v11 = vsel %vm49_vm0, %v61_v9, 0.0  ;;  %v2698_v1 = vpack.c.bf16 %v107_v55, %v95_v53  ;;  %v139_v8 = vld [vmem:[%s3656_s3 + $0x170] sm:$0xff]  ;;  %v2700_v9 = vpack.c.bf16 %v132_v61, %v120_v59 }
  0x98   :  { %64 = vadd.xlane.f32.xlu1 %v63_v11  ;;  %v3125_v11 = vpack.c.bf16 %v140_v63, %v128_v62  ;;  %v2734_v15 = vpack.c.bf16 %v139_v8, %v127_v7  ;;  %v163_v62 = vsub.s32 4, %v3210_v40  ;;  %v171_v8 = vsub.s32 6, %v3210_v40 }
  0x99   :  { %v62_v12 = vmul.f32 %v3006_v10, %v3006_v10 }
  0x9b   :  { %v66_v13 = vsel %vm49_vm0, %v62_v12, 0.0 }
  0x9c   :  { %67 = vadd.xlane.f32.xlu1 %v66_v13  ;;  %v110_v13 = vld [vmem:[%s3656_s3 + $0x88] sm:$0xff] }
 0x125   :  { %v65_v45 = vpop.xlane.xlu1 %64 }
 0x126   :  { %v69_v46 = vmul.f32 0.03125, %v65_v45  ;;  %v3220_v45 = vrot.slane %v3216_v42, %v155_v41 }
 0x128   :  { %v71_v47 = vadd.f32 1e-05, %v69_v46 }
 0x129   :  { %v68_v48 = vpop.xlane.xlu1 %67 }
 0x12a   :  { %2849 = vrsqrt.f32 %v71_v47  ;;  %v70_v49 = vmul.f32 0.03125, %v68_v48  ;;  %v151_v47 = vsub.s32 1, %v3210_v40 }
 0x12c   :  { %v72_v50 = vadd.f32 1e-05, %v70_v49  ;;  %v3233_v48 = vrot.slane %v3216_v42, %v151_v47 }
 0x12e   :  { %2851 = vrsqrt.f32 %v72_v50 }
 0x134   :  { %v2850_v51 = vpop.eup %2849 }
 0x135   :  { %v75_v54 = vmul.f32 %v2850_v51, %v3002_v6  ;;  %v131_v6 = vld [vmem:[%s3656_s3 + $0x130] sm:$0xff] }
 0x136   :  { %v2702_v14 = vpack.c.bf16 %v131_v6, %v119_v3 }
 0x137   :  { %v83_v60 = vmul.f32 %v2401_v52, %v75_v54 }
 0x138   :  { %v2852_v0 = vpop.eup %2851 }
 0x139   :  { %v3113_v4 = vadd.f32 %v2402_v58, %v83_v60  ;;  %v76_v5 = vmul.f32 %v2852_v0, %v3006_v10  ;;  %v98_v10 = vld [vmem:[%s3656_s3 + $0x28] sm:$0xff]  ;;  %v141_v0 = vld [vmem:[%s3657_s4] sm:$0xff] }
 0x13a   :  { %v2704_v19 = vpack.c.bf16 %v110_v13, %v98_v10  ;;  %v152_v13 = vrot.slane %v141_v0, %v151_v47 }
 0x13b   :  { %v84_v12 = vmul.f32 %v2401_v52, %v76_v5  ;;  %2403 = vmatmul.mubr.msk.f32.vlgmr.msra.gmra.mrb[0].mxu0 %vm49_vm0, %v3113_v4  ;;  %2409 = vmatmul.mubr.msk.f32.vlgmr.msra.gmra.mrb[0].mxu1 %vm49_vm0, %v3113_v4  ;;  %v167_v5 = vsub.s32 5, %v3210_v40 }
 0x13c   :  { %2699 = vmatpush1.bf16.msra.mxu0 %v2698_v1  ;;  %2842 = vmatpush1.bf16.msra.mxu1 %v3108_v2  ;;  %v147_v1 = vsub.s32 0, %v3210_v40 }
 0x13d   :  { %v92_v16 = vadd.f32 %v2402_v58, %v84_v12  ;;  %281 = vmatprep.mubr.f32.mxu0 %v2919_v43  ;;  %512 = vmatprep.mubr.f32.mxu1 %v2919_v43 }
 0x13e   :  { %2701 = vmatprep.subr.bf16.mxu0 %v2700_v9  ;;  %2841 = vmatprep.subr.bf16.mxu1 %v3125_v11  ;;  %v148_v6 = vrot.slane %v141_v0, %v147_v1 }
 0x13f   :  { %2404 = vmatmul.mubr.msk.f32.gmra.mrb[2].mxu0 %vm49_vm0, %v92_v16  ;;  %2410 = vmatmul.mubr.msk.f32.gmra.mrb[2].mxu1 %vm49_vm0, %v92_v16 }
 0x140   :  { %2703 = vmatpush1.bf16.msra.mxu0 %v2702_v14  ;;  %2843 = vmatpush1.bf16.msra.mxu1 %v2734_v15 }
 0x141   :  { %352 = vmatprep.mubr.f32.mxu0 %v2919_v43  ;;  %666 = vmatprep.mubr.f32.mxu1 %v2919_v43 }
 0x142   :  { %2705 = vmatprep.subr.bf16.mxu0 %v2704_v19  ;;  %2567 = vmatprep.subr.mxu1 %v2919_v43 }
 0x143   :  { %2405 = vmatmul.mubr.msk.f32.vlgmr.msra.gmra.mrb[4].mxu0 %vm49_vm0, %v3113_v4  ;;  %2414 = vmatmul.mubr.msk.f32.vlgmr.msra.gmra.mrb[4].mxu1 %vm49_vm0, %v92_v16 }
 0x144   :  { %2707 = vmatpush1.bf16.msra.mxu0 %v2706_v22  ;;  %358 = vmatprep.mubr.f32.mxu0 %v2919_v43  ;;  %v156_v22 = vrot.slane %v141_v0, %v155_v41 }
 0x145   :  { %2709 = vmatprep.subr.bf16.mxu0 %v2708_v23  ;;  %2569 = vmatprep.mubr.msk.f32.mxu1 %vm2920_vm1, %v2919_v43 }
 0x147   :  { %2406 = vmatmul.mubr.msk.f32.gmra.mrb[6].mxu0 %vm49_vm0, %v92_v16 }
 0x148   :  { %2711 = vmatpush1.bf16.msra.mxu0 %v2710_v28  ;;  %429 = vmatprep.mubr.f32.mxu0 %v2919_v43 }
 0x149   :  { %2721 = vmatprep.subr.bf16.mxu0 %v2720_v29 }
 0x14b   :  { %2407 = vmatmul.mubr.msk.f32.vlgmr.msra.gmra.mrb[8].mxu0 %vm49_vm0, %v3113_v4 }
 0x14c   :  { %2723 = vmatpush1.bf16.msra.mxu0 %v2722_v34  ;;  %435 = vmatprep.mubr.f32.mxu0 %v2919_v43 }
 0x14d   :  { %2725 = vmatprep.subr.bf16.mxu0 %v2724_v35  ;;  %v180_v35 = vrot.slane %v3216_v42, %v147_v1 }
 0x14f   :  { %2408 = vmatmul.mubr.msk.f32.gmra.mrb[10].mxu0 %vm49_vm0, %v92_v16 }
 0x150   :  { %2727 = vmatpush1.bf16.msra.mxu0 %v2726_v38  ;;  %583 = vmatprep.mubr.f32.mxu0 %v2919_v43 }
 0x151   :  { %2729 = vmatprep.subr.bf16.mxu0 %v3074_v44  ;;  %v159_v44 = vsub.s32 3, %v3210_v40 }
 0x153   :  { %2411 = vmatmul.mubr.msk.f32.vlgmr.msra.gmra.mrb[12].mxu0 %vm49_vm0, %v3113_v4  ;;  %v3225_v46 = vrot.slane %v3216_v42, %v159_v44  ;;  %v160_v31 = vrot.slane %v141_v0, %v159_v44 }
 0x154   :  { %2731 = vmatpush1.bf16.msra.mxu0 %v3108_v2  ;;  %589 = vmatprep.mubr.f32.mxu0 %v2919_v43 }
 0x155   :  { %2733 = vmatprep.subr.bf16.mxu0 %v3125_v11  ;;  %v168_v11 = vrot.slane %v141_v0, %v167_v5 }
 0x157   :  { %2412 = vmatmul.mubr.msk.f32.gmra.mrb[14].mxu0 %vm49_vm0, %v92_v16  ;;  %v175_v16 = vsub.s32 7, %v3210_v40 }
 0x158   :  { %2735 = vmatpush1.bf16.msra.mxu0 %v2734_v15  ;;  %660 = vmatprep.mubr.f32.mxu0 %v2919_v43  ;;  %v172_v15 = vrot.slane %v141_v0, %v171_v8 }
 0x159   :  { %2562 = vmatprep.subr.mxu0 %v2919_v43  ;;  %v176_v25 = vrot.slane %v141_v0, %v175_v16 }
 0x15b   :  { %2413 = vmatmul.mubr.msk.f32.vlgmr.msra.gmra.mrb[16].mxu0 %vm49_vm0, %v3113_v4  ;;  %v164_v4 = vrot.slane %v141_v0, %v163_v62 }
 0x15c   :  { %2564 = vmatprep.mubr.msk.f32.mxu0 %vm2920_vm1, %v2919_v43 }
 0x20e   :  { %v277_v49 = vpop.f32.mrb[0].mxu0  ;;  %v508_v50 = vpop.f32.mrb[0].mxu1 }
 0x20f   :  { %v279_v51 = vpop.f32.mrb[1].mxu0  ;;  %v510_v52 = vpop.f32.mrb[1].mxu1  ;;  %v278_v10 = vadd.f32 %v277_v49, %v148_v6  ;;  %v509_v24 = vadd.f32 %v508_v50, %v172_v15 }
 0x210   :  { %v280_v20 = vadd.f32 %v279_v51, %v152_v13  ;;  %v511_v33 = vadd.f32 %v510_v52, %v176_v25 }
 0x212   :  { %v283_v53 = vpop.f32.mrb[2].mxu0  ;;  %v514_v54 = vpop.f32.mrb[2].mxu1 }
 0x213   :  { %v285_v55 = vpop.f32.mrb[3].mxu0  ;;  %v3235_v56 = vpop.f32.mrb[3].mxu1  ;;  %v284_v21 = vadd.f32 %v283_v53, %v148_v6  ;;  %v515_v34 = vadd.f32 %v514_v54, %v172_v15 }
 0x214   :  { %v286_v29 = vadd.f32 %v285_v55, %v152_v13  ;;  %v517_v41 = vadd.f32 %v3235_v56, %v176_v25 }
 0x216   :  { %v354_v57 = vpop.f32.mrb[4].mxu0  ;;  %v668_v58 = vpop.f32.mrb[4].mxu1 }
 0x217   :  { %v3238_v59 = vadd.f32 %v668_v58, %v3220_v45  ;;  %v356_v60 = vpop.f32.mrb[5].mxu0  ;;  %v670_v61 = vpop.f32.mrb[5].mxu1  ;;  %v355_v30 = vadd.f32 %v354_v57, %v156_v22 }
 0x218   :  { %v3242_v63 = vadd.f32 %v670_v61, %v3225_v46  ;;  %v357_v38 = vadd.f32 %v356_v60, %v160_v31 }
 0x21a   :  { %v360_v2 = vpop.f32.mrb[6].mxu0 }
 0x21b   :  { %v3248_v3 = vpop.f32.mrb[7].mxu0  ;;  %v361_v39 = vadd.f32 %v360_v2, %v156_v22 }
 0x21c   :  { %v363_v49 = vadd.f32 %v3248_v3, %v160_v31 }
 0x21e   :  { %v431_v7 = vpop.f32.mrb[8].mxu0 }
 0x21f   :  { %v432_v9 = vadd.f32 %v431_v7, %v164_v4  ;;  %v433_v12 = vpop.f32.mrb[9].mxu0 }
 0x220   :  { %v434_v17 = vadd.f32 %v433_v12, %v168_v11 }
 0x221   :  { %2563 = vmatpush3.xpose.msra.mxu0 %v432_v9 }
 0x222   :  { %v437_v14 = vpop.f32.mrb[10].mxu0  ;;  %2572 = vmatprep.subr.mxu0 %v2919_v43 }
 0x223   :  { %v438_v18 = vadd.f32 %v437_v14, %v164_v4  ;;  %v439_v19 = vpop.f32.mrb[11].mxu0 }
 0x224   :  { %2565 = vmatmul.mubr.f32.vlgmr.msra.gmra.mrb[18].mxu0 %v278_v10  ;;  %v440_v26 = vadd.f32 %v439_v19, %v168_v11 }
 0x225   :  { %2568 = vmatpush3.xpose.msra.mxu1 %v438_v18  ;;  %2573 = vmatpush3.xpose.msra.mxu0 %v434_v17 }
 0x226   :  { %v585_v23 = vpop.f32.mrb[12].mxu0  ;;  %2574 = vmatprep.mubr.msk.f32.mxu0 %vm2920_vm1, %v2919_v43  ;;  %2577 = vmatprep.subr.mxu1 %v2919_v43 }
 0x227   :  { %v587_v27 = vpop.f32.mrb[13].mxu0  ;;  %2582 = vmatprep.subr.mxu0 %v2919_v43  ;;  %v586_v42 = vadd.f32 %v585_v23, %v180_v35 }
 0x228   :  { %v3259_v28 = vadd.f32 %v587_v27, %v3233_v48  ;;  %2570 = vmatmul.mubr.f32.vlgmr.msra.gmra.mrb[6].mxu1 %v284_v21  ;;  %2575 = vmatmul.mubr.f32.vlgmr.msra.gmra.mrb[20].mxu0 %v280_v20 }
 0x229   :  { %2578 = vmatpush3.xpose.msra.mxu1 %v440_v26  ;;  %2583 = vmatpush3.xpose.msra.mxu0 %v509_v24 }
 0x22a   :  { %v591_v32 = vpop.f32.mrb[14].mxu0  ;;  %2579 = vmatprep.mubr.msk.f32.mxu1 %vm2920_vm1, %v2919_v43  ;;  %2584 = vmatprep.mubr.msk.f32.mxu0 %vm2920_vm1, %v2919_v43 }
 0x22b   :  { %v593_v36 = vpop.f32.mrb[15].mxu0  ;;  %2587 = vmatprep.subr.mxu1 %v2919_v43  ;;  %2592 = vmatprep.subr.mxu0 %v2919_v43 }
 0x22c   :  { %v3271_v37 = vadd.f32 %v593_v36, %v3233_v48  ;;  %2580 = vmatmul.mubr.f32.vlgmr.msra.gmra.mrb[8].mxu1 %v286_v29  ;;  %2585 = vmatmul.mubr.f32.vlgmr.msra.gmra.mrb[22].mxu0 %v355_v30 }
 0x22d   :  { %2588 = vmatpush3.xpose.msra.mxu1 %v515_v34  ;;  %2593 = vmatpush3.xpose.msra.mxu0 %v511_v33 }
 0x22e   :  { %v662_v40 = vpop.f32.mrb[16].mxu0  ;;  %2589 = vmatprep.mubr.msk.f32.mxu1 %vm2920_vm1, %v2919_v43  ;;  %2594 = vmatprep.mubr.msk.f32.mxu0 %vm2920_vm1, %v2919_v43 }
 0x22f   :  { %v3279_v44 = vadd.f32 %v662_v40, %v3220_v45  ;;  %v664_v47 = vpop.f32.mrb[17].mxu0  ;;  %2597 = vmatprep.subr.mxu1 %v2919_v43  ;;  %2602 = vmatprep.subr.mxu0 %v2919_v43  ;;  %v592_v45 = vadd.f32 %v591_v32, %v180_v35 }
 0x230   :  { %v3284_v48 = vadd.f32 %v664_v47, %v3225_v46  ;;  %2590 = vmatmul.mubr.f32.vlgmr.msra.gmra.mrb[10].mxu1 %v361_v39  ;;  %2595 = vmatmul.mubr.f32.vlgmr.msra.gmra.mrb[24].mxu0 %v357_v38 }
 0x231   :  { %2598 = vmatpush3.xpose.msra.mxu1 %v517_v41  ;;  %2603 = vmatpush3.msra.mxu0 %v586_v42 }
 0x232   :  { %2599 = vmatprep.mubr.msk.f32.mxu1 %vm2920_vm1, %v2919_v43  ;;  %2607 = vmatprep.subr.mxu1 %v2919_v43 }
 0x233   :  { %2604 = vmatprep.mubr.msk.f32.mxu0 %vm2920_vm1, %v2919_v43  ;;  %2612 = vmatprep.subr.mxu0 %v2919_v43 }
 0x234   :  { %2600 = vmatmul.mubr.f32.vlgmr.msra.gmra.mrb[12].mxu1 %v363_v49 }
 0x235   :  { %2608 = vmatpush3.msra.mxu1 %v592_v45  ;;  %2609 = vmatprep.mubr.msk.f32.mxu1 %vm2920_vm1, %v2919_v43 }
 0x236   :  { %2617 = vmatprep.subr.mxu1 %v2919_v43 }
 0x2f7   :  { %v739_v46 = vpop.f32.mrb[18].mxu0 }
 0x2f8   :  { %v1233_v50 = vmul.f32 0.35355338, %v739_v46  ;;  %v2566_v51 = vpop.f32.mrb[19].mxu0 }
 0x2fa   :  { %v1242_v52 = vsel %vm1241_vm2, %v1233_v50, -inf }
 0x2fb   :  { %1243 = vmax.xlane.f32.xlu0 %v1242_v52  ;;  %v809_v53 = vpop.f32.mrb[6].mxu1  ;;  %v879_v54 = vpop.f32.mrb[20].mxu0 }
 0x2fc   :  { %v1234_v55 = vmul.f32 0.35355338, %v809_v53  ;;  %v1235_v56 = vmul.f32 0.35355338, %v879_v54  ;;  %v2571_v57 = vpop.f32.mrb[7].mxu1  ;;  %v2576_v58 = vpop.f32.mrb[21].mxu0 }
 0x2fe   :  { %v1248_v60 = vsel %vm1241_vm2, %v1235_v56, -inf  ;;  %v1245_v61 = vsel %vm1241_vm2, %v1234_v55, -inf }
 0x2ff   :  { %1249 = vmax.xlane.f32.xlu0 %v1248_v60  ;;  %v1019_v62 = vpop.f32.mrb[22].mxu0  ;;  %1246 = vmax.xlane.f32.xlu1 %v1245_v61  ;;  %v949_v0 = vpop.f32.mrb[8].mxu1 }
 0x300   :  { %v1237_v1 = vmul.f32 0.35355338, %v1019_v62  ;;  %v1236_v2 = vmul.f32 0.35355338, %v949_v0  ;;  %v2581_v3 = vpop.f32.mrb[9].mxu1  ;;  %v2586_v4 = vpop.f32.mrb[23].mxu0 }
 0x302   :  { %v1254_v5 = vsel %vm1241_vm2, %v1237_v1, -inf  ;;  %v1251_v6 = vsel %vm1241_vm2, %v1236_v2, -inf }
 0x303   :  { %1255 = vmax.xlane.f32.xlu0 %v1254_v5  ;;  %v1159_v7 = vpop.f32.mrb[24].mxu0  ;;  %1252 = vmax.xlane.f32.xlu1 %v1251_v6  ;;  %v1089_v8 = vpop.f32.mrb[10].mxu1 }
 0x304   :  { %v1239_v9 = vmul.f32 0.35355338, %v1159_v7  ;;  %v1238_v11 = vmul.f32 0.35355338, %v1089_v8  ;;  %v2591_v12 = vpop.f32.mrb[11].mxu1  ;;  %v2596_v10 = vpop.f32.mrb[25].mxu0 }
 0x306   :  { %v1260_v13 = vsel %vm1241_vm2, %v1239_v9, -inf  ;;  %v1257_v14 = vsel %vm1241_vm2, %v1238_v11, -inf }
 0x307   :  { %1261 = vmax.xlane.f32.xlu0 %v1260_v13  ;;  %1258 = vmax.xlane.f32.xlu1 %v1257_v14  ;;  %v1229_v15 = vpop.f32.mrb[12].mxu1 }
 0x308   :  { %v1240_v16 = vmul.f32 0.35355338, %v1229_v15  ;;  %v2601_v17 = vpop.f32.mrb[13].mxu1 }
 0x309   :  { %v1931_v17 = vld [vmem:[%s3658_s5 + $0x88] sm:$0xff] }
 0x30a   :  { %v1263_v18 = vsel %vm1241_vm2, %v1240_v16, -inf }
 0x30b   :  { %1264 = vmax.xlane.f32.xlu1 %v1263_v18 }
 0x388   :  { %v1244_v19 = vpop.xlane.xlu0 %1243 }
 0x389   :  { %v1266_v20 = vsub.f32 %v1233_v50, %v1244_v19 }
 0x38b   :  { %v1274_v21 = vmul.f32 1.442695, %v1266_v20  ;;  %v1914_v20 = vld [vmem:[%s3658_s5] sm:$0xff] }
 0x38c   :  { %v1250_v22 = vpop.xlane.xlu0 %1249  ;;  %v1247_v23 = vpop.xlane.xlu1 %1246 }
 0x38d   :  { %2853 = vpow2.f32 %v1274_v21  ;;  %v1268_v24 = vsub.f32 %v1235_v56, %v1250_v22  ;;  %v1267_v25 = vsub.f32 %v1234_v55, %v1247_v23  ;;  %v1933_v23 = vld [vmem:[%s3658_s5 + $0x98] sm:$0xff] }
 0x38f   :  { %v1278_v26 = vmul.f32 1.442695, %v1268_v24  ;;  %v1276_v27 = vmul.f32 1.442695, %v1267_v25  ;;  %v1962_v24 = vld [vmem:[%s3658_s5 + $0x180] sm:$0xff]  ;;  %v1963_v25 = vld [vmem:[%s3658_s5 + $0x188] sm:$0xff] }
 0x390   :  { %v1256_v29 = vpop.xlane.xlu0 %1255  ;;  %v1253_v30 = vpop.xlane.xlu1 %1252 }
 0x391   :  { %2855 = vpow2.f32 %v1278_v26  ;;  %v1270_v31 = vsub.f32 %v1237_v1, %v1256_v29  ;;  %v1269_v32 = vsub.f32 %v1236_v2, %v1253_v30 }
 0x392   :  { %2857 = vpow2.f32 %v1276_v27 }
 0x393   :  { %v1282_v33 = vmul.f32 1.442695, %v1270_v31  ;;  %v1280_v34 = vmul.f32 1.442695, %v1269_v32  ;;  %v1916_v31 = vld [vmem:[%s3658_s5 + $0x10] sm:$0xff]  ;;  %v1917_v32 = vld [vmem:[%s3658_s5 + $0x18] sm:$0xff] }
 0x394   :  { %v1262_v35 = vpop.xlane.xlu0 %1261  ;;  %v1259_v36 = vpop.xlane.xlu1 %1258 }
 0x395   :  { %2859 = vpow2.f32 %v1282_v33  ;;  %v1272_v38 = vsub.f32 %v1239_v9, %v1262_v35  ;;  %v1271_v39 = vsub.f32 %v1238_v11, %v1259_v36  ;;  %v2768_v35 = vpack.c.bf16 %v1963_v25, %v1962_v24  ;;  %v1946_v36 = vld [vmem:[%s3658_s5 + $0x100] sm:$0xff]  ;;  %v1955_v24 = vld [vmem:[%s3658_s5 + $0x148] sm:$0xff] }
 0x396   :  { %2861 = vpow2.f32 %v1280_v34  ;;  %v1935_v34 = vld [vmem:[%s3658_s5 + $0xa8] sm:$0xff] }
 0x397   :  { %v2854_v40 = vpop.eup %2853  ;;  %v1286_v41 = vmul.f32 1.442695, %v1272_v38  ;;  %v1284_v42 = vmul.f32 1.442695, %v1271_v39  ;;  %v1947_v38 = vld [vmem:[%s3658_s5 + $0x108] sm:$0xff]  ;;  %v1964_v39 = vld [vmem:[%s3658_s5 + $0x190] sm:$0xff] }
 0x398   :  { %v1265_v47 = vpop.xlane.xlu1 %1264  ;;  %v1290_v49 = vsel %vm1241_vm2, %v2854_v40, 0.0 }
 0x399   :  { %2863 = vpow2.f32 %v1286_v41  ;;  %v1273_v45 = vsub.f32 %v1240_v16, %v1265_v47  ;;  %1291 = vadd.xlane.f32.xlu0 %v1290_v49  ;;  %v2742_v41 = vpack.c.bf16 %v1917_v32, %v1916_v31  ;;  %v1918_v49 = vld [vmem:[%s3658_s5 + $0x20] sm:$0xff]  ;;  %v1944_v32 = vld [vmem:[%s3658_s5 + $0xf0] sm:$0xff] }
 0x39a   :  { %2865 = vpow2.f32 %v1284_v42 }
 0x39b   :  { %v2856_v46 = vpop.eup %2855  ;;  %v1288_v50 = vmul.f32 1.442695, %v1273_v45  ;;  %v1919_v45 = vld [vmem:[%s3658_s5 + $0x28] sm:$0xff] }
 0x39c   :  { %v2858_v51 = vpop.eup %2857  ;;  %v1296_v52 = vsel %vm1241_vm2, %v2856_v46, 0.0 }
 0x39d   :  { %2867 = vpow2.f32 %v1288_v50  ;;  %1297 = vadd.xlane.f32.xlu0 %v1296_v52  ;;  %v1293_v53 = vsel %vm1241_vm2, %v2858_v51, 0.0  ;;  %v1936_v50 = vld [vmem:[%s3658_s5 + $0xb0] sm:$0xff] }
 0x39e   :  { %1294 = vadd.xlane.f32.xlu1 %v1293_v53  ;;  %v1948_v52 = vld [vmem:[%s3658_s5 + $0x110] sm:$0xff]  ;;  %v1949_v53 = vld [vmem:[%s3658_s5 + $0x118] sm:$0xff] }
 0x39f   :  { %v2860_v54 = vpop.eup %2859 }
 0x3a0   :  { %v2862_v55 = vpop.eup %2861  ;;  %v1302_v56 = vsel %vm1241_vm2, %v2860_v54, 0.0 }
 0x3a1   :  { %1303 = vadd.xlane.f32.xlu0 %v1302_v56  ;;  %v1299_v57 = vsel %vm1241_vm2, %v2862_v55, 0.0  ;;  %v2746_v56 = vpack.c.bf16 %v1919_v45, %v1918_v49  ;;  %v1975_v49 = vld [vmem:[%s3658_s5 + $0x1e8] sm:$0xff] }
 0x3a2   :  { %1300 = vadd.xlane.f32.xlu1 %v1299_v57 }
 0x3a3   :  { %v2864_v58 = vpop.eup %2863 }
 0x3a4   :  { %v3309_v60 = vpop.eup %2865  ;;  %v1308_v61 = vsel %vm1241_vm2, %v2864_v58, 0.0 }
 0x3a5   :  { %1309 = vadd.xlane.f32.xlu0 %v1308_v61  ;;  %v1305_v62 = vsel %vm1241_vm2, %v3309_v60, 0.0  ;;  %v2774_v61 = vpack.c.bf16 %v1949_v53, %v1948_v52  ;;  %v1960_v53 = vld [vmem:[%s3658_s5 + $0x170] sm:$0xff] }
 0x3a6   :  { %1306 = vadd.xlane.f32.xlu1 %v1305_v62  ;;  %v1938_v62 = vld [vmem:[%s3658_s5 + $0xc0] sm:$0xff] }
 0x3a7   :  { %v3314_v0 = vpop.eup %2867 }
 0x3a8   :  { %v1311_v1 = vsel %vm1241_vm2, %v3314_v0, 0.0 }
 0x3aa   :  { %1312 = vadd.xlane.f32.xlu1 %v1311_v1 }
 0x426   :  { %v1292_v2 = vpop.xlane.xlu0 %1291 }
 0x427   :  { %2869 = vrcp.f32 %v1292_v2  ;;  %v1950_v2 = vld [vmem:[%s3658_s5 + $0x120] sm:$0xff] }
 0x42a   :  { %v1298_v3 = vpop.xlane.xlu0 %1297 }
 0x42b   :  { %2871 = vrcp.f32 %v1298_v3  ;;  %v1295_v4 = vpop.xlane.xlu1 %1294  ;;  %v1951_v3 = vld [vmem:[%s3658_s5 + $0x128] sm:$0xff] }
 0x42c   :  { %2873 = vrcp.f32 %v1295_v4  ;;  %v1968_v4 = vld [vmem:[%s3658_s5 + $0x1b0] sm:$0xff] }
 0x42e   :  { %v1304_v5 = vpop.xlane.xlu0 %1303 }
 0x42f   :  { %2875 = vrcp.f32 %v1304_v5  ;;  %v1301_v6 = vpop.xlane.xlu1 %1300  ;;  %v1969_v5 = vld [vmem:[%s3658_s5 + $0x1b8] sm:$0xff] }
 0x430   :  { %2877 = vrcp.f32 %v1301_v6 }
 0x431   :  { %v2870_v7 = vpop.eup %2869 }
 0x432   :  { %v1322_v8 = vmul.f32 %v2870_v7, %v2854_v40  ;;  %v1310_v9 = vpop.xlane.xlu0 %1309  ;;  %v1965_v40 = vld [vmem:[%s3658_s5 + $0x198] sm:$0xff] }
 0x433   :  { %2879 = vrcp.f32 %v1310_v9  ;;  %v1307_v11 = vpop.xlane.xlu1 %1306  ;;  %v1923_v9 = vld [vmem:[%s3658_s5 + $0x48] sm:$0xff] }
 0x434   :  { %2881 = vrcp.f32 %v1307_v11  ;;  %2605 = vmatmul.mubr.msk.f32.vlgmr.msra.gmra.mrb[26].mxu0 %vm1241_vm2, %v1322_v8  ;;  %v1922_v8 = vld [vmem:[%s3658_s5 + $0x40] sm:$0xff]  ;;  %v2778_v11 = vpack.c.bf16 %v1951_v3, %v1950_v2 }
 0x435   :  { %v2872_v12 = vpop.eup %2871  ;;  %2613 = vmatpush3.msra.mxu0 %v3259_v28  ;;  %2614 = vmatprep.mubr.msk.f32.mxu0 %vm2920_vm1, %v2919_v43  ;;  %v1930_v28 = vld [vmem:[%s3658_s5 + $0x80] sm:$0xff] }
 0x436   :  { %v2874_v10 = vpop.eup %2873  ;;  %v1324_v13 = vmul.f32 %v2872_v12, %v2856_v46  ;;  %2622 = vmatprep.subr.mxu0 %v2919_v43  ;;  %v2736_v22 = vpack.c.bf16 %v1931_v17, %v1930_v28  ;;  %v2770_v46 = vpack.c.bf16 %v1947_v38, %v1946_v36  ;;  %v1940_v12 = vld [vmem:[%s3658_s5 + $0xd0] sm:$0xff]  ;;  %v1971_v28 = vld [vmem:[%s3658_s5 + $0x1c8] sm:$0xff]  ;;  %v2754_v17 = vpack.c.bf16 %v1923_v9, %v1922_v8  ;;  %v1929_v36 = vld [vmem:[%s3658_s5 + $0x78] sm:$0xff] }
 0x437   :  { %v1323_v14 = vmul.f32 %v2874_v10, %v2858_v51  ;;  %v1313_v15 = vpop.xlane.xlu1 %1312  ;;  %v1941_v10 = vld [vmem:[%s3658_s5 + $0xd8] sm:$0xff] }
 0x438   :  { %2883 = vrcp.f32 %v1313_v15  ;;  %2615 = vmatmul.mubr.msk.f32.vlgmr.msra.gmra.mrb[28].mxu0 %vm1241_vm2, %v1324_v13  ;;  %v2780_v13 = vpack.c.bf16 %v1969_v5, %v1968_v4  ;;  %v1953_v15 = vld [vmem:[%s3658_s5 + $0x138] sm:$0xff] }
 0x439   :  { %v2876_v16 = vpop.eup %2875  ;;  %2610 = vmatmul.mubr.msk.f32.vlgmr.msra.gmra.mrb[14].mxu1 %vm1241_vm2, %v1323_v14  ;;  %2623 = vmatpush3.msra.mxu0 %v3279_v44  ;;  %v1915_v44 = vld [vmem:[%s3658_s5 + $0x8] sm:$0xff]  ;;  %v1952_v14 = vld [vmem:[%s3658_s5 + $0x130] sm:$0xff] }
 0x43a   :  { %v2878_v18 = vpop.eup %2877  ;;  %v1326_v19 = vmul.f32 %v2876_v16, %v2860_v54  ;;  %2618 = vmatpush3.msra.mxu1 %v3271_v37  ;;  %2619 = vmatprep.mubr.msk.f32.mxu1 %vm2920_vm1, %v2919_v43  ;;  %v1932_v37 = vld [vmem:[%s3658_s5 + $0x90] sm:$0xff]  ;;  %v2738_v27 = vpack.c.bf16 %v1915_v44, %v1914_v20  ;;  %v1966_v54 = vld [vmem:[%s3658_s5 + $0x1a0] sm:$0xff]  ;;  %v1925_v20 = vld [vmem:[%s3658_s5 + $0x58] sm:$0xff]  ;;  %v2782_v44 = vpack.c.bf16 %v1953_v15, %v1952_v14 }
 0x43b   :  { %v1325_v21 = vmul.f32 %v2878_v18, %v2862_v55  ;;  %2624 = vmatprep.mubr.msk.f32.mxu0 %vm2920_vm1, %v2919_v43  ;;  %2627 = vmatprep.subr.mxu1 %v2919_v43  ;;  %v1967_v55 = vld [vmem:[%s3658_s5 + $0x1a8] sm:$0xff]  ;;  %v1970_v16 = vld [vmem:[%s3658_s5 + $0x1c0] sm:$0xff]  ;;  %v2756_v18 = vpack.c.bf16 %v1941_v10, %v1940_v12 }
 0x43c   :  { %2632 = vmatprep.subr.mxu0 %v2919_v43  ;;  %2625 = vmatmul.mubr.msk.f32.vlgmr.msra.gmra.mrb[30].mxu0 %vm1241_vm2, %v1326_v19  ;;  %v2776_v1 = vpack.c.bf16 %v1967_v55, %v1966_v54  ;;  %v1924_v19 = vld [vmem:[%s3658_s5 + $0x50] sm:$0xff]  ;;  %v1961_v54 = vld [vmem:[%s3658_s5 + $0x178] sm:$0xff]  ;;  %v2423_v15 = vld [vmem:[%s3659_s6] ss:$0 sm:$0xff] }
 0x43d   :  { %v2880_v26 = vpop.eup %2879  ;;  %2620 = vmatmul.mubr.msk.f32.vlgmr.msra.gmra.mrb[16].mxu1 %vm1241_vm2, %v1325_v21  ;;  %2633 = vmatpush3.msra.mxu0 %v3284_v48  ;;  %v1934_v48 = vld [vmem:[%s3658_s5 + $0xa0] sm:$0xff]  ;;  %v2758_v25 = vpack.c.bf16 %v1925_v20, %v1924_v19  ;;  %v2798_v55 = vpack.c.bf16 %v1961_v54, %v1960_v53  ;;  %v2288_v54 = vld [vmem:[%s3664_s11 + $0x28] sm:$0xff] }
 0x43e   :  { %v2882_v29 = vpop.eup %2881  ;;  %v1328_v30 = vmul.f32 %v2880_v26, %v2864_v58  ;;  %2628 = vmatpush3.msra.mxu1 %v3238_v59  ;;  %2629 = vmatprep.mubr.msk.f32.mxu1 %vm2920_vm1, %v2919_v43  ;;  %v2740_v59 = vpack.c.bf16 %v1933_v23, %v1932_v37  ;;  %v2744_v47 = vpack.c.bf16 %v1935_v34, %v1934_v48  ;;  %v1920_v58 = vld [vmem:[%s3658_s5 + $0x30] sm:$0xff]  ;;  %v1942_v21 = vld [vmem:[%s3658_s5 + $0xe0] sm:$0xff]  ;;  %v1943_v37 = vld [vmem:[%s3658_s5 + $0xe8] sm:$0xff] }
 0x43f   :  { %v1327_v33 = vmul.f32 %v2882_v29, %v3309_v60  ;;  %2634 = vmatprep.mubr.msk.f32.mxu0 %vm2920_vm1, %v2919_v43  ;;  %2637 = vmatprep.subr.mxu1 %v2919_v43  ;;  %v1921_v60 = vld [vmem:[%s3658_s5 + $0x38] sm:$0xff]  ;;  %v1954_v23 = vld [vmem:[%s3658_s5 + $0x140] sm:$0xff]  ;;  %v2760_v26 = vpack.c.bf16 %v1943_v37, %v1942_v21  ;;  %v1927_v29 = vld [vmem:[%s3658_s5 + $0x68] sm:$0xff] }
 0x440   :  { %2635 = vmatmul.mubr.msk.f32.vlgmr.msra.gmra.mrb[32].mxu0 %vm1241_vm2, %v1328_v30  ;;  %2737 = vmatprep.subr.bf16.mxu0 %v2736_v22  ;;  %v2750_v6 = vpack.c.bf16 %v1921_v60, %v1920_v58  ;;  %v2784_v22 = vpack.c.bf16 %v1971_v28, %v1970_v16  ;;  %v2786_v30 = vpack.c.bf16 %v1955_v24, %v1954_v23  ;;  %v1945_v48 = vld [vmem:[%s3658_s5 + $0xf8] sm:$0xff]  ;;  %v2893_v21 = vld [vmem:[%s3653_s0] sm:$0xff] }
 0x441   :  { %2630 = vmatmul.mubr.msk.f32.vlgmr.msra.gmra.mrb[18].mxu1 %vm1241_vm2, %v1327_v33  ;;  %2739 = vmatpush3.bf16.msra.mxu0 %v2738_v27  ;;  %v1926_v27 = vld [vmem:[%s3658_s5 + $0x60] sm:$0xff]  ;;  %v1972_v33 = vld [vmem:[%s3658_s5 + $0x1d0] sm:$0xff]  ;;  %v1973_v34 = vld [vmem:[%s3658_s5 + $0x1d8] sm:$0xff] }
 0x442   :  { %v2884_v42 = vpop.eup %2883  ;;  %2638 = vmatpush3.msra.mxu1 %v3242_v63  ;;  %2639 = vmatprep.mubr.msk.f32.mxu1 %vm2920_vm1, %v2919_v43  ;;  %v1937_v43 = vld [vmem:[%s3658_s5 + $0xb8] sm:$0xff]  ;;  %v2772_v63 = vpack.c.bf16 %v1965_v40, %v1964_v39  ;;  %v2762_v31 = vpack.c.bf16 %v1927_v29, %v1926_v27  ;;  %v2788_v38 = vpack.c.bf16 %v1973_v34, %v1972_v33  ;;  %v1956_v40 = vld [vmem:[%s3658_s5 + $0x150] sm:$0xff]  ;;  %v2894_v27 = vld [vmem:[%s3653_s0 + $0x8] sm:$0xff] }
 0x443   :  { %v1329_v51 = vmul.f32 %v2884_v42, %v3314_v0  ;;  %2741 = vmatprep.subr.bf16.mxu0 %v2740_v59  ;;  %2769 = vmatprep.subr.bf16.mxu1 %v2768_v35  ;;  %v2748_v57 = vpack.c.bf16 %v1937_v43, %v1936_v50  ;;  %v1939_v0 = vld [vmem:[%s3658_s5 + $0xc8] sm:$0xff]  ;;  %v2764_v59 = vpack.c.bf16 %v1945_v48, %v1944_v32  ;;  %v1928_v35 = vld [vmem:[%s3658_s5 + $0x70] sm:$0xff]  ;;  %v2287_v53 = vld [vmem:[%s3664_s11 + $0x20] sm:$0xff] }
 0x444   :  { %v2752_v7 = vpack.c.bf16 %v1939_v0, %v1938_v62  ;;  %v2766_v39 = vpack.c.bf16 %v1929_v36, %v1928_v35  ;;  %v1959_v50 = vld [vmem:[%s3658_s5 + $0x168] sm:$0xff]  ;;  %v1976_v43 = vld [vmem:[%s3658_s5 + $0x1f0] sm:$0xff] }
 0x445   :  { %2640 = vmatmul.mubr.msk.f32.vlgmr.msra.gmra.mrb[20].mxu1 %vm1241_vm2, %v1329_v51  ;;  %2743 = vmatpush3.bf16.msra.mxu0 %v2742_v41  ;;  %v1957_v41 = vld [vmem:[%s3658_s5 + $0x158] sm:$0xff] }
 0x446   :  { %2745 = vmatprep.subr.bf16.mxu0 %v2744_v47  ;;  %2771 = vmatpush3.bf16.msra.mxu1 %v2770_v46  ;;  %v2790_v42 = vpack.c.bf16 %v1957_v41, %v1956_v40  ;;  %v1974_v47 = vld [vmem:[%s3658_s5 + $0x1e0] sm:$0xff]  ;;  %v2182_v41 = vld [vmem:[%s3662_s9 + $0x8] sm:$0xff] }
 0x447   :  { %2773 = vmatprep.subr.bf16.mxu1 %v2772_v63  ;;  %v2792_v45 = vpack.c.bf16 %v1975_v49, %v1974_v47  ;;  %v1958_v46 = vld [vmem:[%s3658_s5 + $0x160] sm:$0xff]  ;;  %v1977_v63 = vld [vmem:[%s3658_s5 + $0x1f8] sm:$0xff]  ;;  %v2183_v47 = vld [vmem:[%s3662_s9 + $0x10] sm:$0xff]  ;;  %s2921_s5 = smov [#allocation2]  }
 0x448   :  { %v2794_v51 = vpack.c.bf16 %v1959_v50, %v1958_v46  ;;  %v2796_v52 = vpack.c.bf16 %v1977_v63, %v1976_v43  ;;  %v2181_v40 = vld [vmem:[%s3662_s9] sm:$0xff]  ;;  %v2184_v49 = vld [vmem:[%s3662_s9 + $0x18] sm:$0xff]  ;;  %v2284_v50 = vld [vmem:[%s3664_s11 + $0x8] sm:$0xff]  ;;  %s2390_s25 = sshll.u32 %s2921_s5, 4  ;;  %s2391_s25 = int_to_ptr.vmem [resolvable:$true] %s2390_s25 }
 0x449   :  { %2747 = vmatpush3.bf16.msra.mxu0 %v2746_v56  ;;  %v2283_v46 = vld [vmem:[%s3664_s11] sm:$0xff]  ;;  %v2286_v63 = vld [vmem:[%s3664_s11 + $0x18] sm:$0xff]  ;;  %s2895_s26 = scalar_lea.vmem %s2391_s25, 256  ;;  %p2900_p1 = scmp.lt.s32.totalorder %s2391_s25, %s2391_s25 }
 0x44a   :  { %2749 = vmatprep.subr.bf16.mxu0 %v2748_v57  ;;  %2775 = vmatpush3.bf16.msra.mxu1 %v2774_v61  ;;  %v2808_v43 = vpack.c.bf16 %v2284_v50, %v2283_v46  ;;  %p2896_p0 = scmp.ne.s32.totalorder %s2391_s25, %s2895_s26  ;;  %p2901_p2 = scmp.lt.s32.totalorder %s2895_s26, %s2895_s26 }
 0x44b   :  { %2777 = vmatprep.subr.bf16.mxu1 %v2776_v1 }
 0x44c   :  { %p2902_p3 = por %p2901_p2, %p2900_p1 }
 0x44d   :  { %2751 = vmatpush3.bf16.msra.mxu0 %v2750_v6 }
 0x44e   :  { %2753 = vmatprep.subr.bf16.mxu0 %v2752_v7  ;;  %2779 = vmatpush3.bf16.msra.mxu1 %v2778_v11  ;;  %p2903_p4 = pnand %p2902_p3, %p2896_p0 }
 0x44f   :  { %2781 = vmatprep.subr.bf16.mxu1 %v2780_v13 }
 0x451   :  { %2755 = vmatpush3.bf16.msra.mxu0 %v2754_v17 }
 0x452   :  { %2757 = vmatprep.subr.bf16.mxu0 %v2756_v18  ;;  %2783 = vmatpush3.bf16.msra.mxu1 %v2782_v44 }
 0x453   :  { %2785 = vmatprep.subr.bf16.mxu1 %v2784_v22 }
 0x455   :  { %2759 = vmatpush3.bf16.msra.mxu0 %v2758_v25 }
 0x456   :  { %2761 = vmatprep.subr.bf16.mxu0 %v2760_v26  ;;  %2787 = vmatpush3.bf16.msra.mxu1 %v2786_v30 }
 0x457   :  { %2789 = vmatprep.subr.bf16.mxu1 %v2788_v38 }
 0x459   :  { %2763 = vmatpush3.bf16.msra.mxu0 %v2762_v31 }
 0x45a   :  { %2765 = vmatprep.subr.bf16.mxu0 %v2764_v59  ;;  %2791 = vmatpush3.bf16.msra.mxu1 %v2790_v42  ;;  %v2800_v42 = vpack.c.bf16 %v2182_v41, %v2181_v40 }
 0x45b   :  { %2793 = vmatprep.subr.bf16.mxu1 %v2792_v45  ;;  %v2804_v45 = vpack.c.bf16 %v2184_v49, %v2183_v47 }
 0x45d   :  { %2767 = vmatpush3.bf16.msra.mxu0 %v2766_v39 }
 0x45e   :  { %2795 = vmatpush3.bf16.msra.mxu1 %v2794_v51  ;;  %2801 = vmatprep.subr.bf16.mxu0 %v2800_v42  ;;  %v2285_v51 = vld [vmem:[%s3664_s11 + $0x10] sm:$0xff] }
 0x45f   :  { %2797 = vmatprep.subr.bf16.mxu1 %v2796_v52  ;;  %v2812_v52 = vpack.c.bf16 %v2286_v63, %v2285_v51 }
 0x462   :  { %2799 = vmatpush3.bf16.msra.mxu1 %v2798_v55  ;;  %v2816_v55 = vpack.c.bf16 %v2288_v54, %v2287_v53 }
 0x463   :  { %2809 = vmatprep.subr.bf16.mxu1 %v2808_v43 }
 0x507   :  { %v1399_v56 = vpop.f32.mrb[26].mxu0 }
 0x508   :  { %v2606_v57 = vpop.f32.mrb[27].mxu0 }
 0x50b   :  { %v1545_v58 = vpop.f32.mrb[28].mxu0 }
 0x50c   :  { %v1472_v60 = vpop.f32.mrb[14].mxu1  ;;  %v2616_v61 = vpop.f32.mrb[29].mxu0  ;;  %2049 = vmatprep.mubr.f32.mxu0 %v1545_v58 }
 0x50d   :  { %v2611_v62 = vpop.f32.mrb[15].mxu1  ;;  %2050 = vmatmul.mubr.f32.vlgmr.msra.gmra.mrb[34].mxu0 %v1399_v56 }
 0x50e   :  { %2803 = vmatpush3.bf16.msra.mxu0 %v2800_v42 }
 0x50f   :  { %v1691_v0 = vpop.f32.mrb[30].mxu0  ;;  %2805 = vmatprep.subr.bf16.mxu0 %v2804_v45 }
 0x510   :  { %v1618_v1 = vpop.f32.mrb[16].mxu1  ;;  %v2626_v2 = vpop.f32.mrb[31].mxu0 }
 0x511   :  { %v2621_v3 = vpop.f32.mrb[17].mxu1  ;;  %2054 = vmatprep.mubr.f32.mxu0 %v1618_v1  ;;  %v2424_v1 = vld [vmem:[%s3660_s7] ss:$0 sm:$0xff] }
 0x512   :  { %2055 = vmatmul.mubr.f32.gmra.mrb[36].mxu0 %v1472_v60  ;;  %v2425_v3 = vld [vmem:[%s3661_s8] ss:$0 sm:$0xff] }
 0x513   :  { %v1837_v4 = vpop.f32.mrb[32].mxu0  ;;  %2807 = vmatpush3.bf16.msra.mxu0 %v2804_v45 }
 0x514   :  { %v1764_v5 = vpop.f32.mrb[18].mxu1  ;;  %v2636_v6 = vpop.f32.mrb[33].mxu0  ;;  %2124 = vmatprep.mubr.f32.mxu1 %v1837_v4 }
 0x515   :  { %v2631_v7 = vpop.f32.mrb[19].mxu1  ;;  %2125 = vmatmul.mubr.f32.vlgmr.msra.gmra.mrb[22].mxu1 %v1691_v0 }
 0x516   :  { %2811 = vmatpush3.bf16.msra.mxu1 %v2808_v43 }
 0x517   :  { %2813 = vmatprep.subr.bf16.mxu1 %v2812_v52 }
 0x518   :  { %v1910_v8 = vpop.f32.mrb[20].mxu1 }
 0x519   :  { %v2641_v9 = vpop.f32.mrb[21].mxu1  ;;  %2129 = vmatprep.mubr.f32.mxu1 %v1910_v8 }
 0x51a   :  { %2130 = vmatmul.mubr.f32.gmra.mrb[24].mxu1 %v1764_v5 }
 0x51b   :  { %2815 = vmatpush3.bf16.msra.mxu1 %v2812_v52 }
 0x51c   :  { %2817 = vmatprep.subr.bf16.mxu1 %v2816_v55 }
 0x51f   :  { %2819 = vmatpush3.bf16.msra.mxu1 %v2816_v55 }
 0x5e0   :  { %v2494_v11 = vpop.f32.mrb[34].mxu0 }
 0x5e1   :  { %v2495_v12 = vpop.f32.mrb[35].mxu0 }
 0x5e2   :  { %v2496_v10 = vadd.f32 %v2495_v12, %v2494_v11  ;;  %v2289_v11 = vld [vmem:[%s3664_s11 + $0x30] sm:$0xff]  ;;  %v2290_v12 = vld [vmem:[%s3664_s11 + $0x38] sm:$0xff] }
 0x5e4   :  { %v2052_v18 = vadd.f32 %v2496_v10, %v2423_v15  ;;  %v2820_v10 = vpack.c.bf16 %v2290_v12, %v2289_v11 }
 0x5e5   :  { %v2497_v13 = vpop.f32.mrb[36].mxu0 }
 0x5e6   :  { %v2498_v14 = vpop.f32.mrb[37].mxu0  ;;  %2821 = vmatprep.subr.bf16.mxu1 %v2820_v10 }
 0x5e7   :  { %v2499_v16 = vadd.f32 %v2498_v14, %v2497_v13  ;;  %2823 = vmatpush3.bf16.msra.mxu1 %v2820_v10  ;;  %v2291_v13 = vld [vmem:[%s3664_s11 + $0x40] sm:$0xff]  ;;  %v2292_v14 = vld [vmem:[%s3664_s11 + $0x48] sm:$0xff] }
 0x5e8   :  { %v2532_v28 = vpop.f32.mrb[22].mxu1 }
 0x5e9   :  { %v2533_v17 = vpop.f32.mrb[23].mxu1  ;;  %v2057_v23 = vadd.f32 %v2499_v16, %v2423_v15  ;;  %v2824_v15 = vpack.c.bf16 %v2292_v14, %v2291_v13  ;;  %v2293_v16 = vld [vmem:[%s3664_s11 + $0x50] sm:$0xff] }
 0x5ea   :  { %v2534_v19 = vadd.f32 %v2533_v17, %v2532_v28  ;;  %v2294_v28 = vld [vmem:[%s3664_s11 + $0x58] sm:$0xff] }
 0x5eb   :  { %2825 = vmatprep.subr.bf16.mxu1 %v2824_v15  ;;  %v2828_v17 = vpack.c.bf16 %v2294_v28, %v2293_v16 }
 0x5ec   :  { %v2127_v20 = vadd.f32 %v2534_v19, %v2052_v18  ;;  %2827 = vmatpush3.bf16.msra.mxu1 %v2824_v15  ;;  %v2295_v18 = vld [vmem:[%s3664_s11 + $0x60] sm:$0xff]  ;;  %v2296_v19 = vld [vmem:[%s3664_s11 + $0x68] sm:$0xff] }
 0x5ed   :  { %v2535_v44 = vpop.f32.mrb[24].mxu1  ;;  %2829 = vmatprep.subr.bf16.mxu1 %v2828_v17 }
 0x5ee   :  { %v3548_v37 = vadd.f32 %v2893_v21, %v2127_v20  ;;  %v2536_v22 = vpop.f32.mrb[25].mxu1  ;;  %v2832_v20 = vpack.c.bf16 %v2296_v19, %v2295_v18  ;;  %v2298_v21 = vld [vmem:[%s3664_s11 + $0x78] sm:$0xff] }
 0x5ef   :  { %v2537_v24 = vadd.f32 %v2536_v22, %v2535_v44  ;;  %v2297_v44 = vld [vmem:[%s3664_s11 + $0x70] sm:$0xff] }
 0x5f0   :  { %v2139_v25 = vsel %vm49_vm0, %v3548_v37, 0.0  ;;  %2831 = vmatpush3.bf16.msra.mxu1 %v2828_v17  ;;  %v2836_v22 = vpack.c.bf16 %v2298_v21, %v2297_v44 }
 0x5f1   :  { %v2132_v26 = vadd.f32 %v2537_v24, %v2057_v23  ;;  %2140 = vadd.xlane.f32.xlu0 %v2139_v25  ;;  %2833 = vmatprep.subr.bf16.mxu1 %v2832_v20  ;;  %v2426_v23 = vld [vmem:[%s3663_s10] ss:$0 sm:$0xff] }
 0x5f3   :  { %v3555_v29 = vadd.f32 %v2894_v27, %v2132_v26 }
 0x5f4   :  { %2835 = vmatpush3.bf16.msra.mxu1 %v2832_v20 }
 0x5f5   :  { %v2142_v30 = vsel %vm49_vm0, %v3555_v29, 0.0  ;;  %2837 = vmatprep.subr.bf16.mxu1 %v2836_v22 }
 0x5f6   :  { %2143 = vadd.xlane.f32.xlu1 %v2142_v30 }
 0x5f8   :  { %2839 = vmatpush3.bf16.msra.mxu1 %v2836_v22 }
 0x67e   :  { %v2141_v31 = vpop.xlane.xlu0 %2140 }
 0x67f   :  { %v2145_v32 = vmul.f32 0.03125, %v2141_v31 }
 0x681   :  { %v2147_v48 = vsub.f32 %v3548_v37, %v2145_v32 }
 0x683   :  { %v2144_v33 = vpop.xlane.xlu1 %2143  ;;  %v2149_v59 = vmul.f32 %v2147_v48, %v2147_v48 }
 0x684   :  { %v2146_v34 = vmul.f32 0.03125, %v2144_v33 }
 0x685   :  { %v2151_v35 = vsel %vm49_vm0, %v2149_v59, 0.0 }
 0x686   :  { %v2148_v36 = vsub.f32 %v3555_v29, %v2146_v34  ;;  %2152 = vadd.xlane.f32.xlu0 %v2151_v35 }
 0x688   :  { %v2150_v38 = vmul.f32 %v2148_v36, %v2148_v36 }
 0x68a   :  { %v2154_v39 = vsel %vm49_vm0, %v2150_v38, 0.0 }
 0x68b   :  { %2155 = vadd.xlane.f32.xlu1 %v2154_v39  ;;  %v2429_v39 = vld [vmem:[%s3665_s12] ss:$0 sm:$0xff] }
 0x713   :  { %v2153_v56 = vpop.xlane.xlu0 %2152 }
 0x714   :  { %v2157_v57 = vmul.f32 0.03125, %v2153_v56 }
 0x716   :  { %v2159_v58 = vadd.f32 1e-05, %v2157_v57 }
 0x718   :  { %2885 = vrsqrt.f32 %v2159_v58  ;;  %v2156_v60 = vpop.xlane.xlu1 %2155 }
 0x719   :  { %v2158_v61 = vmul.f32 0.03125, %v2156_v60 }
 0x71b   :  { %v2160_v62 = vadd.f32 1e-05, %v2158_v61 }
 0x71d   :  { %2887 = vrsqrt.f32 %v2160_v62 }
 0x722   :  { %v2886_v0 = vpop.eup %2885 }
 0x723   :  { %v2163_v2 = vmul.f32 %v2886_v0, %v2147_v48 }
 0x725   :  { %v2171_v4 = vmul.f32 %v2424_v1, %v2163_v2 }
 0x727   :  { %v2888_v5 = vpop.eup %2887  ;;  %v2179_v6 = vadd.f32 %v2425_v3, %v2171_v4 }
 0x728   :  { %v2164_v7 = vmul.f32 %v2888_v5, %v2148_v36 }
 0x729   :  { %2650 = vmatprep.mubr.msk.f32.mxu0 %vm49_vm0, %v2179_v6 }
 0x72a   :  { %v2172_v8 = vmul.f32 %v2424_v1, %v2164_v7 }
 0x72c   :  { %v2180_v9 = vadd.f32 %v2425_v3, %v2172_v8 }
 0x72e   :  { %2651 = vmatmul.mubr.msk.f32.vlgmr.msra.gmra.mrb[38].mxu0 %vm49_vm0, %v2180_v9 }
 0x801   :  { %v2652_v24 = vpop.f32.mrb[38].mxu0 }
 0x802   :  { %v2270_v25 = vadd.f32 %v2652_v24, %v2426_v23  ;;  %v2264_v26 = vpop.f32.mrb[39].mxu0 }
 0x803   :  { %v2265_v27 = vadd.f32 %v2426_v23, %v2264_v26 }
 0x804   :  { %v2276_v30 = vmul.f32 0.70710677, %v2270_v25  ;;  %v2274_v35 = vmul.f32 0.5, %v2270_v25 }
 0x805   :  { %v2275_v31 = vmul.f32 0.70710677, %v2265_v27  ;;  %v2273_v59 = vmul.f32 0.5, %v2265_v27 }
 0x806   :  { %2889 = verf.f32 %v2276_v30 }
 0x807   :  { %2891 = verf.f32 %v2275_v31 }
 0x810   :  { %v2890_v32 = vpop.eup %2889 }
 0x811   :  { %v2892_v48 = vpop.eup %2891  ;;  %v2280_v33 = vadd.f32 1.0, %v2890_v32 }
 0x812   :  { %v2279_v34 = vadd.f32 1.0, %v2892_v48 }
 0x813   :  { %v2282_v38 = vmul.f32 %v2280_v33, %v2274_v35 }
 0x814   :  { %v2281_v36 = vmul.f32 %v2279_v34, %v2273_v59 }
 0x816   :  { %2685 = vmatprep.mubr.f32.mxu1 %v2281_v36 }
 0x817   :  { %2686 = vmatmul.mubr.f32.vlgmr.msra.gmra.mrb[26].mxu1 %v2282_v38 }
 0x8ea   :  { %v2687_v40 = vpop.f32.mrb[26].mxu1 }
 0x8eb   :  { %v2378_v41 = vadd.f32 %v2687_v40, %v2429_v39  ;;  %v2372_v42 = vpop.f32.mrb[27].mxu1 }
 0x8ec   :  { %v2373_v47 = vadd.f32 %v2429_v39, %v2372_v42 }
 0x8ed   :  { %v2382_v49 = vadd.f32 %v2378_v41, %v3555_v29 }
 0x8ee   :  { %v2381_v45 = vadd.f32 %v2373_v47, %v3548_v37 }
 0x8ef   :  { %2384 = vst.msk [vmem:[#allocation2 + $0x8] sm:$0xff] %vm49_vm0, %v2382_v49 }
 0x8f0   :  { %2383 = vst.msk [vmem:[#allocation2] sm:$0xff] %vm49_vm0, %v2381_v45 }
 0x8f1   :  { %2906 = shalt.err (!%p2903_p4)
}
 0x8f2   :  { %s2907_s6 = scalar_lea.hbm %s3666_s13, 256 }
 0x8f3   :  { %p2908_p5 = scmp.ne.s32.totalorder %s3666_s13, %s2907_s6  ;;  %p2911_p6 = scmp.lt.u32.totalorder %s2907_s6, %s3666_s13 }
 0x8f5   :  { %p2913_p7 = pnand %p2911_p6, %p2908_p5 }
 0x8f7   :  { %2916 = shalt.err (!%p2913_p7)
}
 0x8f8   :  { %s2922_s8 = smov 128   ;;  %s2923_s29 = smov 8  }
 0x8f9   :  { %2396 = dma.vmem_to_hbm [thread:$0]  %s2391_s25, 256, %s3666_s13, [#allocation3], %s2922_s8, %s2922_s8, %s2923_s29  }
 0x8fa   :  { %2917 = dma.done.wait [#allocation3], 256  }
 0x8fb   :  { %2918 = vsyncadd [#allocation3], 4294967040 }
 0x8fc   :  { %2400 = vsyncpa [#allocation3], 1 }

</bundles_post_ra>
